<compile_context>
chip_gen: v6e
topology: v6e:2x2x1
jax: 0.10.0
libtpu: 0.0.40
codegen_flags: <defaults>
</compile_context>

<pallas_src>
import jax
import jax.numpy as jnp
from jax.experimental import pallas as pl
from jax.experimental.pallas import tpu as pltpu


HIDDEN = 256  # nn.Linear(input, 256)


def discriminator_kernel(x_ref, w1_ref, b1_ref, w2_ref, b2_ref, o_ref):
    # ---- Linear(input, 256) on the MXU: bf16 operands, f32 accumulation ----
    x = x_ref[...].astype(jnp.bfloat16)       # no-op if caller already passes bf16
    w1 = w1_ref[...].astype(jnp.bfloat16)
    h = jnp.dot(x, w1, preferred_element_type=jnp.float32) + b1_ref[...]
    # ---- LeakyReLU(0.01) on the VPU ----
    h = jnp.where(h > 0, h, 0.01 * h)
    # ---- Linear(256, 1): VPU multiply + lane reduce (avoid N=1 MXU matmul) ----
    # w2 is passed as a (1, HIDDEN) row; result is a 1-D (block_b,) vector.
    y = jnp.sum(h * w2_ref[...], axis=-1) + b2_ref[0, 0]
    # ---- Sigmoid: exp on the EUP, approx reciprocal also on the EUP ----
    sig = pl.reciprocal(1.0 + jnp.exp(-y), approx=True)
    # ---- Lane-dense store: o_ref block is (1, block_b) ----
    o_ref[...] = sig[None, :]


def _choose_block_b(B):
    # v5e MXU is 128-wide in M; v6e/v7x are 256-wide. Keep >= 2 grid steps
    # whenever the batch allows it (dual TensorCore / megacore sharding).
    if B >= 512:
        return 256
    if B >= 128:
        return 128
    return max(8, ((B + 7) // 8) * 8)   # tiny batch: single sublane-aligned tile


def discriminator_forward(x, w1, b1, w2, b2, *, block_b=None):
    """Forward pass of the Discriminator.

    x : (B, D) float array.
    w1: (D, HIDDEN)  (PyTorch nn.Linear weight transposed)
    b1: (HIDDEN,)
    w2: (HIDDEN, 1)
    b2: (1,)
    Returns (B, 1) float32, matching nn.Sequential(Linear, LeakyReLU, Linear, Sigmoid).
    """
    B, D = x.shape
    d_pad = ((D + 127) // 128) * 128            # 784 -> 896: aligned K / lane extent
    if block_b is None:
        block_b = _choose_block_b(B)
    b_pad = ((B + block_b - 1) // block_b) * block_b
    num_tiles = b_pad // block_b

    # One-time weight packing (pad K rows with zeros, bf16 for the MXU).
    w1p = jnp.pad(w1, ((0, d_pad - D), (0, 0))).astype(jnp.bfloat16)
    b1p = jnp.asarray(b1, jnp.float32).reshape(1, HIDDEN)
    w2p = jnp.asarray(w2, jnp.float32).reshape(1, HIDDEN)   # row vector for the reduce
    b2p = jnp.asarray(b2, jnp.float32).reshape(1, 1)        # scalar, lives in SMEM

    # Activations: zero-pad batch/feature edges and go bf16 (halves x DMA bytes).
    # In a real pipeline the producer would emit this layout directly.
    xp = jnp.pad(x, ((0, b_pad - B), (0, d_pad - D))).astype(jnp.bfloat16)

    out = pl.pallas_call(
        discriminator_kernel,
        out_shape=jax.ShapeDtypeStruct((1, b_pad), jnp.float32),
        grid_spec=pltpu.PrefetchScalarGridSpec(
            num_scalar_prefetch=0,
            grid=(num_tiles,),
            in_specs=[
                pl.BlockSpec((block_b, d_pad), lambda i: (i, 0)),     # x tile
                pl.BlockSpec((d_pad, HIDDEN), lambda i: (0, 0)),      # W1 (full)
                pl.BlockSpec((1, HIDDEN), lambda i: (0, 0)),          # b1
                pl.BlockSpec((1, HIDDEN), lambda i: (0, 0)),          # w2 row
                pl.BlockSpec(memory_space=pltpu.MemorySpace.SMEM),    # b2 scalar
            ],
            out_specs=pl.BlockSpec((1, block_b), lambda i: (0, i)),   # lane-dense
        ),
        compiler_params=pltpu.CompilerParams(
            dimension_semantics=("parallel",),
        ),
    )(xp, w1p, b1p, w2p, b2p)

    return out.reshape(-1)[:B].reshape(B, 1)


def init_params(key, in_features):
    # PyTorch nn.Linear default init: U(-1/sqrt(fan_in), 1/sqrt(fan_in)).
    k1, k2, k3, k4 = jax.random.split(key, 4)
    bound1 = 1.0 / jnp.sqrt(float(in_features))
    w1 = jax.random.uniform(k1, (in_features, HIDDEN), jnp.float32, -bound1, bound1)
    b1 = jax.random.uniform(k2, (HIDDEN,), jnp.float32, -bound1, bound1)
    bound2 = 1.0 / jnp.sqrt(float(HIDDEN))
    w2 = jax.random.uniform(k3, (HIDDEN, 1), jnp.float32, -bound2, bound2)
    b2 = jax.random.uniform(k4, (1,), jnp.float32, -bound2, bound2)
    return w1, b1, w2, b2


def reference_forward(x, w1, b1, w2, b2):
    h = x @ w1 + b1
    h = jnp.where(h > 0, h, 0.01 * h)
    y = h @ w2 + b2
    return jax.nn.sigmoid(y)


if __name__ == "__main__":
    key = jax.random.PRNGKey(0)
    k_x, k_p = jax.random.split(key)

    # Flattened 28x28 MNIST-style inputs; B deliberately not a tile multiple
    # to exercise the padding path (500 -> 512, 4 grid steps of block_b=128).
    B, D = 500, 784
    x = jax.random.normal(k_x, (B, D), jnp.float32)
    w1, b1, w2, b2 = init_params(k_p, D)

    out = discriminator_forward(x, w1, b1, w2, b2)
    out = jax.block_until_ready(out)

    ref = reference_forward(x, w1, b1, w2, b2)
    assert out.shape == (B, 1)
    # bf16 MXU operands + approximate reciprocal => compare loosely to the
    # full-f32 reference (sigmoid output is bounded in [0, 1]).
    assert jnp.allclose(out, ref, atol=2e-2, rtol=0.0), "mismatch vs reference"

    print("KERNEL_OK")
</pallas_src>

<mosaic_0001>
module attributes {stable_mosaic.version = 11 : i64} {
  func.func @discriminator_kernel(%arg0: i32, %arg1: memref<128x896xbf16, #tpu.memory_space<vmem>>, %arg2: memref<896x256xbf16, #tpu.memory_space<vmem>>, %arg3: memref<1x256xf32, #tpu.memory_space<vmem>>, %arg4: memref<1x256xf32, #tpu.memory_space<vmem>>, %arg5: memref<1x1xf32, #tpu.memory_space<smem>>, %arg6: memref<1x128xf32, #tpu.memory_space<vmem>>) attributes {dimension_semantics = [#tpu.dimension_semantics<parallel>], iteration_bounds = array<i64: 4>, scalar_prefetch = 0 : i64, scratch_operands = 0 : i64, tpu.core_type = #tpu.core_type<tc>, window_params = [{transform_indices = @transform_0, window_bounds = array<i64: 128, 896>}, {pipeline_mode = #tpu.pipeline_mode<synchronous>, transform_indices = @transform_1, window_bounds = array<i64: 896, 256>}, {pipeline_mode = #tpu.pipeline_mode<synchronous>, transform_indices = @transform_2, window_bounds = array<i64: 1, 256>}, {pipeline_mode = #tpu.pipeline_mode<synchronous>, transform_indices = @transform_3, window_bounds = array<i64: 1, 256>}, {transform_indices = @transform_4, window_bounds = array<i64: 1, 1>}, {transform_indices = @transform_5, window_bounds = array<i64: 1, 128>}]} {
    %c0 = arith.constant 0 : index
    %c0_0 = arith.constant 0 : index
    %0 = vector.load %arg1[%c0, %c0_0] : memref<128x896xbf16, #tpu.memory_space<vmem>>, vector<128x896xbf16>
    %c0_1 = arith.constant 0 : index
    %c0_2 = arith.constant 0 : index
    %1 = vector.load %arg2[%c0_1, %c0_2] : memref<896x256xbf16, #tpu.memory_space<vmem>>, vector<896x256xbf16>
    %cst = arith.constant dense<0.000000e+00> : vector<128x256xf32>
    %2 = tpu.matmul %0, %1, %cst {dimension_numbers = #tpu.dot_dimension_numbers<[1], [0], [0], [1], [0, 0, 1, 1], [], []>} : vector<128x896xbf16>, vector<896x256xbf16>, vector<128x256xf32> -> vector<128x256xf32>
    %c0_3 = arith.constant 0 : index
    %c0_4 = arith.constant 0 : index
    %3 = vector.load %arg3[%c0_3, %c0_4] : memref<1x256xf32, #tpu.memory_space<vmem>>, vector<1x256xf32>
    %4 = vector.broadcast %3 : vector<1x256xf32> to vector<128x256xf32>
    %5 = arith.addf %2, %4 : vector<128x256xf32>
    %cst_5 = arith.constant 0.000000e+00 : f32
    %6 = vector.broadcast %cst_5 : f32 to vector<128x256xf32>
    %7 = arith.cmpf ogt, %5, %6 : vector<128x256xf32>
    %cst_6 = arith.constant 0.00999999977 : f32
    %8 = vector.broadcast %cst_6 : f32 to vector<128x256xf32>
    %9 = arith.mulf %8, %5 : vector<128x256xf32>
    %10 = arith.select %7, %5, %9 : vector<128x256xi1>, vector<128x256xf32>
    %c0_7 = arith.constant 0 : index
    %c0_8 = arith.constant 0 : index
    %11 = vector.load %arg4[%c0_7, %c0_8] : memref<1x256xf32, #tpu.memory_space<vmem>>, vector<1x256xf32>
    %12 = vector.broadcast %11 : vector<1x256xf32> to vector<128x256xf32>
    %13 = arith.mulf %10, %12 : vector<128x256xf32>
    %cst_9 = arith.constant dense<0.000000e+00> : vector<128xf32>
    %14 = vector.multi_reduction <add>, %13, %cst_9 [1] : vector<128x256xf32> to vector<128xf32>
    %c0_10 = arith.constant 0 : index
    %c0_11 = arith.constant 0 : index
    %15 = memref.load %arg5[%c0_10, %c0_11] : memref<1x1xf32, #tpu.memory_space<smem>>
    %16 = vector.broadcast %15 : f32 to vector<128xf32>
    %17 = arith.addf %14, %16 : vector<128xf32>
    %cst_12 = arith.constant 0.000000e+00 : f32
    %18 = vector.broadcast %cst_12 : f32 to vector<128xf32>
    %19 = arith.subf %18, %17 : vector<128xf32>
    %20 = math.exp %19 : vector<128xf32>
    %cst_13 = arith.constant 1.000000e+00 : f32
    %21 = vector.broadcast %cst_13 : f32 to vector<128xf32>
    %22 = arith.addf %21, %20 : vector<128xf32>
    %23 = tpu.reciprocal %22 {approx = true} : vector<128xf32> -> vector<128xf32>
    %24 = vector.shape_cast %23 : vector<128xf32> to vector<1x128xf32>
    %c0_14 = arith.constant 0 : index
    %c0_15 = arith.constant 0 : index
    %25 = vector.load %arg6[%c0_14, %c0_15] : memref<1x128xf32, #tpu.memory_space<vmem>>, vector<1x128xf32>
    tpu.vector_store %arg6[%c0_14, %c0_15], %24 {strides = array<i32>} : memref<1x128xf32, #tpu.memory_space<vmem>>, vector<1x128xf32>,
    return
  }
  func.func @transform_0(%arg0: i32) -> (i32, i32) {
    %c0_i32 = arith.constant 0 : i32
    %c0_i32_0 = arith.constant 0 : i32
    return %arg0, %c0_i32 : i32, i32
  }
  func.func @transform_1(%arg0: i32) -> (i32, i32) {
    %c0_i32 = arith.constant 0 : i32
    %c0_i32_0 = arith.constant 0 : i32
    %c0_i32_1 = arith.constant 0 : i32
    return %c0_i32, %c0_i32_0 : i32, i32
  }
  func.func @transform_2(%arg0: i32) -> (i32, i32) {
    %c0_i32 = arith.constant 0 : i32
    %c0_i32_0 = arith.constant 0 : i32
    %c0_i32_1 = arith.constant 0 : i32
    return %c0_i32, %c0_i32_0 : i32, i32
  }
  func.func @transform_3(%arg0: i32) -> (i32, i32) {
    %c0_i32 = arith.constant 0 : i32
    %c0_i32_0 = arith.constant 0 : i32
    %c0_i32_1 = arith.constant 0 : i32
    return %c0_i32, %c0_i32_0 : i32, i32
  }
  func.func @transform_4(%arg0: i32) -> (i32, i32) {
    %c0_i32 = arith.constant 0 : i32
    %c0_i32_0 = arith.constant 0 : i32
    %c0_i32_1 = arith.constant 0 : i32
    return %c0_i32, %c0_i32_0 : i32, i32
  }
  func.func @transform_5(%arg0: i32) -> (i32, i32) {
    %c0_i32 = arith.constant 0 : i32
    %c0_i32_0 = arith.constant 0 : i32
    return %c0_i32, %arg0 : i32, i32
  }
}

</mosaic_0001>

<bundles_post_ra>
// kernel: tpu_custom_call.1
= control target key start
LH: loop header
LB: loop body
LE: loop exit
PB: predicated region body
PF: predicated region fallthrough
CT: control target
= control target key end

     0   :  { %s3530_s0 = inlined_call_operand.hbm [shape: bf16[512,896], index: 0, kind: input, shape index: {}]   ;;  %s3531_s1 = inlined_call_operand.hbm [shape: bf16[896,256], index: 1, kind: input, shape index: {}]   ;;  %s3532_s2 = inlined_call_operand.vmem [shape: f32[1,256], index: 2, kind: input, shape index: {}]   ;;  %s3533_s3 = inlined_call_operand.vmem [shape: f32[1,256], index: 3, kind: input, shape index: {}]   ;;  %s3534_s4 = inlined_call_operand.<no memory space> [shape: f32[1,1], index: 4, kind: input, shape index: {}]   ;;  %s3535_s5 = inlined_call_operand.hbm [shape: f32[1,512], index: 5, kind: output, shape index: {}]  }
   0x1   :  { %10 = sst [smem:[#allocation2]] %s3534_s4 }
   0x2   :  { %11 = vsyncpa [#allocation4], 0 }
   0x3   :  { %13 = vsyncpa [#allocation4 + $0x1], 0 }
   0x4   :  { %14 = vsyncpa [#allocation7], 0 }
   0x5   :  { %15 = vsyncpa [#allocation5], 0 }
   0x6   :  { %17 = vsyncpa [#allocation5 + $0x1], 0  ;;  %s2975_s20 = smov 0   ;;  %s2977_s21 = smov 0  }
   0x7   :  { %s2979_s22 = smov 0   ;;  %s2981_s23 = smov 0  }
   0x8 LB: > { %s2996_s4 = sadd.s32 4294967295, %s2932_s23   ;;  %s2253_s24 = sadd.s32 4294967294, %s2932_s23   ;;  %s2932_s23 = sphi %s2981_s23, %s3576_s23   ;;  %s2928_s22 = sphi %s2979_s22, %s3575_s22   ;;  %s2924_s21 = sphi %s2977_s21, %s3574_s21   ;;  %s2920_s20 = sphi %s2975_s20, %s3573_s20  }
   0x9   : > { %p43_p0 = scmp.ne.s32.totalorder %s2924_s21, %s2920_s20  ;;  %p3536_p1 = scmp.eq.s32.totalorder %s2996_s4, 0 }
   0xa   : > { %p157_p3 = scmp.eq.s32.totalorder %s2253_s24, 3  ;;  %p2254_p5 = scmp.ge.s32.totalorder %s2932_s23, 1 }
   0xb   : > { %p3005_p4 = por %p3536_p1, %p43_p0  ;;  %p164_p7 = scmp.lt.s32.totalorder %s2932_s23, 5 }
   0xc   : > { %p3010_p6 = por %p157_p3, %p43_p0  ;;  %s2934_s28 = smov [#allocation6]  }
   0xd   : > { %s3544_s25 = scalar_select %p3005_p4, 1, 0 }
   0xe   : > { %s3545_s26 = scalar_select %p3010_p6, 1, 0 }
   0xf   : > { %p3015_p8 = pnand %p2254_p5, %p164_p7  ;;  %s176_s29 = sshll.u32 %s2934_s28, 4  ;;  %s177_s29 = int_to_ptr.vmem [resolvable:$true] %s176_s29 }
  0x10   : > { %s3028_s6 = sadd.s32 1, %s2932_s23   ;;  %s30_s7 = sadd.s32 1, %s2928_s22 }
  0x11   : > { %s3546_s27 = scalar_select %p3015_p8, 1, 0 }
  0x12   : > { %p2444_p9 = pneg %p3015_p8  ;;  %s27_s8 = ssub.s32 %s2932_s23, %s3028_s6 }
  0x13   : > { %s2821_s9 = scalar_lea.vmem %s177_s29, 14336  ;;  %p2829_p3 = scmp.lt.s32.totalorder %s177_s29, %s177_s29 }
  0x14   : > { %p3023_p10 = pnand %p2444_p9, %p3536_p1  ;;  %p2822_p12 = scmp.ne.s32.totalorder %s177_s29, %s2821_s9 }
  0x15   : > { %p2830_p5 = scmp.lt.s32.totalorder %s2821_s9, %s2821_s9 }
  0x16   : > { %p2812_p11 = pneg %p3023_p10 }
  0x17   : > { %p2831_p7 = por %p2830_p5, %p2829_p3 }
  0x18   : > { %p2824_p13 = pnand %p2822_p12, %p2812_p11 }
  0x1a   : > { %p2825_p0 = pneg %p2824_p13 }
  0x1c   : > { %p2832_p2 = pnand %p2831_p7, %p2825_p0 }
  0x1e   : > { %2835 = shalt.err (!%p2832_p2)
}
  0x1f   : > { %s2935_s10 = smov 128   ;;  %s2936_s11 = smov 8  }
  0x20   : > { %2447 = dma.hbm_to_vmem [thread:$0]  (!%p3023_p10), %s3531_s1, 14336, %s177_s29, [#allocation7], %s2935_s10, %s2935_s10, %s2936_s11  }
  0x21   : > { %p28_p9 = scmp.eq.s32.totalorder %s27_s8, 0  ;;  %p37_p11 = scmp.ne.s32.totalorder %s2928_s22, %s2924_s21 }
  0x22   : > { %p38_p12 = scmp.eq.s32.totalorder %s2932_s23, 0  ;;  %p2457_p2 = scmp.lt.s32.totalorder %s2932_s23, 4 }
  0x23   : > { %s3045_s14 = scalar_select %p28_p9, %s2928_s22, %s30_s7  }
  0x24   : > { %p39_p13 = por %p38_p12, %p37_p11  ;;  %p3548_p0 = scmp.eq.s32.totalorder %s2996_s4, 3 }
  0x25   : > { %s199_s16 = sand.u32 1, %s2928_s22   ;;  %s2434_s17 = smul.u32 7168, %s2932_s23 }
  0x26   : > { %p3049_p3 = por %p3548_p0, %p37_p11  ;;  %s2433_s18 = smul.u32 448, %s199_s16 }
  0x27   : > { %s3058_s28 = scalar_lea.hbm %s3530_s0, %s2434_s17  ;;  %p3060_p10 = pnand %p2457_p2, %p39_p13 }
  0x28   : > { %s3549_s15 = scalar_select %p3049_p3, 1, 0 }
  0x29   : > { %s203_s30 = scalar_lea.vmem [#allocation3], %s2433_s18  ;;  %s3066_s8 = scalar_lea.sflag [#allocation4], %s199_s16 }
  0x2a   : > { %s211_s7 = sshll.u32 %s203_s30, 4  ;;  %s2836_s9 = scalar_lea.hbm %s3058_s28, 7168  ;;  %s3064_s7 = int_to_ptr.vmem [resolvable:$true] %s211_s7 }
  0x2b   : > { %p2837_p5 = scmp.ne.s32.totalorder %s3058_s28, %s2836_s9  ;;  %p2838_p7 = pneg %p3060_p10 }
  0x2c   : > { %s2841_s12 = scalar_lea.hbm %s3530_s0, 28672  ;;  %p2842_p12 = scmp.lt.s32.totalorder %s3058_s28, %s3530_s0 }
  0x2d   : > { %p2839_p9 = pnand %p2838_p7, %p2837_p5  ;;  %p2843_p2 = scmp.lt.s32.totalorder %s2841_s12, %s2836_s9 }
  0x2f   : > { %p2840_p11 = pneg %p2839_p9  ;;  %p2844_p13 = por %p2843_p2, %p2842_p12 }
  0x31   : > { %p2845_p0 = pnand %p2844_p13, %p2840_p11 }
  0x33   : > { %2848 = shalt.err (!%p2845_p0)
}
  0x34   : > { %s2849_s16 = scalar_lea.vmem %s3064_s7, 7168  ;;  %s2937_s18 = smov [#allocation3]  }
  0x35   : > { %p2850_p1 = scmp.ne.s32.totalorder %s3064_s7, %s2849_s16  ;;  %s2854_s19 = sshll.u32 %s2937_s18, 4  ;;  %s2855_s19 = int_to_ptr.vmem [resolvable:$false] %s2854_s19 }
  0x36   : > { %s2856_s24 = scalar_lea.vmem %s2855_s19, 14336  ;;  %p2857_p9 = scmp.lt.s32.totalorder %s3064_s7, %s2855_s19 }
  0x37   : > { %p2852_p6 = pnand %p2850_p1, %p2838_p7  ;;  %p2858_p3 = scmp.lt.s32.totalorder %s2856_s24, %s2849_s16 }
  0x39   : > { %p2853_p5 = pneg %p2852_p6  ;;  %p2859_p4 = por %p2858_p3, %p2857_p9 }
  0x3b   : > { %p2860_p8 = pnand %p2859_p4, %p2853_p5 }
  0x3d   : > { %2863 = shalt.err (!%p2860_p8)
}
  0x3e   : > { %s2938_s30 = smov 448   ;;  %s2939_s9 = smov 28  }
  0x3f   : > { %2451 = dma.hbm_to_vmem [thread:$0]  (!%p3060_p10), %s3058_s28, 7168, %s3064_s7, %s3066_s8, %s2938_s30, %s2938_s30, %s2939_s9  }
  0x40   : > { %p3551_p1 = scmp.ne.s32.totalorder %s3546_s27, 0 }
  0x42   : > { %223 = sbr.rel (%p3551_p1) target bundleno = 664 (0x298), region = 40 }
  0x47   : > { %s3090_s10 = sand.u32 1, %s2924_s21   ;;  %p3552_p4 = scmp.ne.s32.totalorder %s3544_s25, 0 }
  0x48   : > { %s2435_s11 = smul.u32 448, %s3090_s10  ;;  %s226_s12 = scalar_lea.sflag [#allocation4], %s3090_s10 }
  0x4a   : > { %s3094_s13 = scalar_lea.vmem [#allocation3], %s2435_s11 }
  0x4b   : > { %2907 = dma.done.wait (%p3552_p4), %s226_s12, 7168  }
  0x4c   : > { %2909 = vsyncadd (%p3552_p4), %s226_s12, 4294960128  ;;  %p3553_p6 = scmp.eq.s32.totalorder %s2996_s4, 0 }
  0x4e   : > { %2911 = dma.done.wait (%p3553_p6), [#allocation7], 14336   ;;  %p3554_p8 = pmov %p3553_p6 }
  0x4f   : > { %v2498_v0 = vld [vmem:[#allocation6 + $0x74] ss:$8 sps:$4 sm:$0xff]   ;;  %v2502_v2 = vld [vmem:[#allocation6 + $0x70] ss:$8 sps:$4 sm:$0xff]   ;;  %v2504_v4 = vld [vmem:[#allocation6 + $0x64] ss:$8 sps:$4 sm:$0xff]  }
  0x50   : > { %2913 = vsyncadd (%p3554_p8), [#allocation7], 4294952960  ;;  %v2500_v1 = vld [vmem:[#allocation6 + $0x174] ss:$8 sps:$4 sm:$0xff]   ;;  %1297 = vmatprep.subr.bf16.mxu0 %v2498_v0  ;;  %v2503_v3 = vld [vmem:[#allocation6 + $0x170] ss:$8 sps:$4 sm:$0xff]  }
  0x51   : > { %1410 = vmatprep.subr.bf16.mxu1 %v2500_v1  ;;  %1298 = vmatpush1.bf16.msra.mxu0 %v2502_v2  ;;  %v2506_v5 = vld [vmem:[#allocation6 + $0x164] ss:$8 sps:$4 sm:$0xff]   ;;  %v2508_v6 = vld [vmem:[#allocation6 + $0x60] ss:$8 sps:$4 sm:$0xff]   ;;  %v2510_v8 = vld [vmem:[#allocation6 + $0x54] ss:$8 sps:$4 sm:$0xff]  }
  0x52   : > { %1411 = vmatpush1.bf16.msra.mxu1 %v2503_v3  ;;  %1299 = vmatprep.subr.bf16.mxu0 %v2504_v4  ;;  %v2509_v7 = vld [vmem:[#allocation6 + $0x160] ss:$8 sps:$4 sm:$0xff]   ;;  %v2512_v9 = vld [vmem:[#allocation6 + $0x154] ss:$8 sps:$4 sm:$0xff]   ;;  %v2514_v10 = vld [vmem:[#allocation6 + $0x50] ss:$8 sps:$4 sm:$0xff]  }
  0x53   : > { %1412 = vmatprep.subr.bf16.mxu1 %v2506_v5  ;;  %v2515_v11 = vld [vmem:[#allocation6 + $0x150] ss:$8 sps:$4 sm:$0xff]   ;;  %v2516_v12 = vld [vmem:[#allocation6 + $0x44] ss:$8 sps:$4 sm:$0xff]   ;;  %v2520_v14 = vld [vmem:[#allocation6 + $0x40] ss:$8 sps:$4 sm:$0xff]  }
  0x54   : > { %v2518_v13 = vld [vmem:[#allocation6 + $0x144] ss:$8 sps:$4 sm:$0xff]   ;;  %v2521_v15 = vld [vmem:[#allocation6 + $0x140] ss:$8 sps:$4 sm:$0xff]   ;;  %v2522_v16 = vld [vmem:[#allocation6 + $0x34] ss:$8 sps:$4 sm:$0xff]  }
  0x55   : > { %1300 = vmatpush1.bf16.msra.mxu0 %v2508_v6  ;;  %v2524_v17 = vld [vmem:[#allocation6 + $0x134] ss:$8 sps:$4 sm:$0xff]   ;;  %v2526_v18 = vld [vmem:[#allocation6 + $0x30] ss:$8 sps:$4 sm:$0xff]   ;;  %v2528_v20 = vld [vmem:[#allocation6 + $0x24] ss:$8 sps:$4 sm:$0xff]  }
  0x56   : > { %1413 = vmatpush1.bf16.msra.mxu1 %v2509_v7  ;;  %1301 = vmatprep.subr.bf16.mxu0 %v2510_v8  ;;  %v2527_v19 = vld [vmem:[#allocation6 + $0x130] ss:$8 sps:$4 sm:$0xff]   ;;  %v2530_v21 = vld [vmem:[#allocation6 + $0x124] ss:$8 sps:$4 sm:$0xff]   ;;  %v2532_v22 = vld [vmem:[#allocation6 + $0x20] ss:$8 sps:$4 sm:$0xff]  }
  0x57   : > { %1414 = vmatprep.subr.bf16.mxu1 %v2512_v9  ;;  %v2533_v23 = vld [vmem:[#allocation6 + $0x120] ss:$8 sps:$4 sm:$0xff]   ;;  %v2534_v24 = vld [vmem:[#allocation6 + $0x14] ss:$8 sps:$4 sm:$0xff]   ;;  %v2538_v26 = vld [vmem:[#allocation6 + $0x10] ss:$8 sps:$4 sm:$0xff]  }
  0x58   : > { %v2536_v25 = vld [vmem:[#allocation6 + $0x114] ss:$8 sps:$4 sm:$0xff]   ;;  %v2539_v27 = vld [vmem:[#allocation6 + $0x110] ss:$8 sps:$4 sm:$0xff]   ;;  %v2540_v28 = vld [vmem:[#allocation6 + $0x4] ss:$8 sps:$4 sm:$0xff]  }
  0x59   : > { %1302 = vmatpush1.bf16.msra.mxu0 %v2514_v10  ;;  %v2542_v29 = vld [vmem:[#allocation6 + $0x104] ss:$8 sps:$4 sm:$0xff]   ;;  %v2544_v30 = vld [vmem:[#allocation6] ss:$8 sps:$4 sm:$0xff]   ;;  %v2546_v32 = vld [vmem:[#allocation6 + $0xf4] ss:$8 sps:$4 sm:$0xff]  }
  0x5a   : > { %1415 = vmatpush1.bf16.msra.mxu1 %v2515_v11  ;;  %1303 = vmatprep.subr.bf16.mxu0 %v2516_v12  ;;  %v2545_v31 = vld [vmem:[#allocation6 + $0x100] ss:$8 sps:$4 sm:$0xff]   ;;  %v2548_v33 = vld [vmem:[#allocation6 + $0x1f4] ss:$8 sps:$4 sm:$0xff]   ;;  %v2550_v34 = vld [vmem:[#allocation6 + $0xf0] ss:$8 sps:$4 sm:$0xff]  }
  0x5b   : > { %1416 = vmatprep.subr.bf16.mxu1 %v2518_v13  ;;  %v2551_v35 = vld [vmem:[#allocation6 + $0x1f0] ss:$8 sps:$4 sm:$0xff]   ;;  %v2552_v36 = vld [vmem:[#allocation6 + $0xe4] ss:$8 sps:$4 sm:$0xff]   ;;  %v2556_v38 = vld [vmem:[#allocation6 + $0xe0] ss:$8 sps:$4 sm:$0xff]  }
  0x5c   : > { %v2554_v37 = vld [vmem:[#allocation6 + $0x1e4] ss:$8 sps:$4 sm:$0xff]   ;;  %v2557_v39 = vld [vmem:[#allocation6 + $0x1e0] ss:$8 sps:$4 sm:$0xff]   ;;  %v2558_v40 = vld [vmem:[#allocation6 + $0xd4] ss:$8 sps:$4 sm:$0xff]  }
  0x5d   : > { %1304 = vmatpush1.bf16.msra.mxu0 %v2520_v14  ;;  %v2560_v41 = vld [vmem:[#allocation6 + $0x1d4] ss:$8 sps:$4 sm:$0xff]   ;;  %v2562_v42 = vld [vmem:[#allocation6 + $0xd0] ss:$8 sps:$4 sm:$0xff]   ;;  %v2564_v44 = vld [vmem:[#allocation6 + $0xc4] ss:$8 sps:$4 sm:$0xff]  }
  0x5e   : > { %1417 = vmatpush1.bf16.msra.mxu1 %v2521_v15  ;;  %1305 = vmatprep.subr.bf16.mxu0 %v2522_v16  ;;  %v2563_v43 = vld [vmem:[#allocation6 + $0x1d0] ss:$8 sps:$4 sm:$0xff]   ;;  %v2566_v45 = vld [vmem:[#allocation6 + $0x1c4] ss:$8 sps:$4 sm:$0xff]   ;;  %v2568_v46 = vld [vmem:[#allocation6 + $0xc0] ss:$8 sps:$4 sm:$0xff]  }
  0x5f   : > { %1418 = vmatprep.subr.bf16.mxu1 %v2524_v17  ;;  %v2569_v47 = vld [vmem:[#allocation6 + $0x1c0] ss:$8 sps:$4 sm:$0xff]   ;;  %v2570_v48 = vld [vmem:[#allocation6 + $0xb4] ss:$8 sps:$4 sm:$0xff]   ;;  %v2574_v52 = vld [vmem:[#allocation6 + $0xb0] ss:$8 sps:$4 sm:$0xff]  }
  0x60   : > { %v2596_v49 = vld [vmem:[%s3094_s13 + $0x4] ss:$28 sps:$4 sm:$0xff]   ;;  %v2572_v50 = vld [vmem:[#allocation6 + $0x1b4] ss:$8 sps:$4 sm:$0xff]   ;;  %v2599_v51 = vld [vmem:[%s3094_s13 + $0xc] ss:$28 sps:$4 sm:$0xff]  }
  0x61   : > { %1306 = vmatpush1.bf16.msra.mxu0 %v2526_v18  ;;  %1329 = vmatprep.mubr.bf16.mxu0 %v2596_v49  ;;  %v2575_v53 = vld [vmem:[#allocation6 + $0x1b0] ss:$8 sps:$4 sm:$0xff]   ;;  %v2576_v54 = vld [vmem:[#allocation6 + $0xa4] ss:$8 sps:$4 sm:$0xff]   ;;  %v2580_v56 = vld [vmem:[#allocation6 + $0xa0] ss:$8 sps:$4 sm:$0xff]  }
  0x62   : > { %1419 = vmatpush1.bf16.msra.mxu1 %v2527_v19  ;;  %1307 = vmatprep.subr.bf16.mxu0 %v2528_v20  ;;  %v2578_v55 = vld [vmem:[#allocation6 + $0x1a4] ss:$8 sps:$4 sm:$0xff]   ;;  %v2581_v57 = vld [vmem:[#allocation6 + $0x1a0] ss:$8 sps:$4 sm:$0xff]   ;;  %v2582_v58 = vld [vmem:[#allocation6 + $0x94] ss:$8 sps:$4 sm:$0xff]  }
  0x63   : > { %1420 = vmatprep.subr.bf16.mxu1 %v2530_v21  ;;  %1442 = vmatprep.mubr.bf16.mxu1 %v2599_v51  ;;  %v2584_v59 = vld [vmem:[#allocation6 + $0x194] ss:$8 sps:$4 sm:$0xff]   ;;  %v2586_v60 = vld [vmem:[#allocation6 + $0x90] ss:$8 sps:$4 sm:$0xff]   ;;  %v2588_v62 = vld [vmem:[#allocation6 + $0x84] ss:$8 sps:$4 sm:$0xff]  }
  0x64   : > { %v2587_v61 = vld [vmem:[#allocation6 + $0x190] ss:$8 sps:$4 sm:$0xff]   ;;  %v2590_v63 = vld [vmem:[#allocation6 + $0x184] ss:$8 sps:$4 sm:$0xff]   ;;  %v2592_v0 = vld [vmem:[#allocation6 + $0x80] ss:$8 sps:$4 sm:$0xff]  }
  0x65   : > { %1308 = vmatpush1.bf16.msra.mxu0 %v2532_v22  ;;  %v2593_v1 = vld [vmem:[#allocation6 + $0x180] ss:$8 sps:$4 sm:$0xff]   ;;  %v2602_v2 = vld [vmem:[#allocation6 + $0x274] ss:$8 sps:$4 sm:$0xff]   ;;  %v2600_v6 = vld [vmem:[#allocation6 + $0x270] ss:$8 sps:$4 sm:$0xff]  }
  0x66   : > { %1421 = vmatpush1.bf16.msra.mxu1 %v2533_v23  ;;  %1309 = vmatprep.subr.bf16.mxu0 %v2534_v24  ;;  %v2605_v3 = vld [vmem:[#allocation6 + $0x374] ss:$8 sps:$4 sm:$0xff]   ;;  %v2597_v5 = vld [vmem:[%s3094_s13 + $0x8] ss:$28 sps:$4 sm:$0xff]   ;;  %v2603_v7 = vld [vmem:[#allocation6 + $0x370] ss:$8 sps:$4 sm:$0xff]  }
  0x67   : > { %1422 = vmatprep.subr.bf16.mxu1 %v2536_v25  ;;  %v2594_v4 = vld [vmem:[%s3094_s13] ss:$28 sps:$4 sm:$0xff]   ;;  %v2608_v8 = vld [vmem:[#allocation6 + $0x264] ss:$8 sps:$4 sm:$0xff]   ;;  %v2613_v16 = vld [vmem:[%s3094_s13 + $0x38] ss:$28 sps:$4 sm:$0xff]  }
  0x68   : > { %v2609_v9 = vld [vmem:[%s3094_s13 + $0x3c] ss:$28 sps:$4 sm:$0xff]   ;;  %v2611_v10 = vld [vmem:[%s3094_s13 + $0x44] ss:$28 sps:$4 sm:$0xff]   ;;  %v2624_v20 = vld [vmem:[%s3094_s13 + $0x74] ss:$28 sps:$4 sm:$0xff]  }
  0x69   : > { %1310 = vmatpush1.bf16.msra.mxu0 %v2538_v26  ;;  %v2620_v11 = vld [vmem:[#allocation6 + $0x364] ss:$8 sps:$4 sm:$0xff]   ;;  %v2606_v12 = vld [vmem:[#allocation6 + $0x260] ss:$8 sps:$4 sm:$0xff]   ;;  %v2617_v13 = vld [vmem:[#allocation6 + $0x254] ss:$8 sps:$4 sm:$0xff]  }
  0x6a   : > { %1423 = vmatpush1.bf16.msra.mxu1 %v2539_v27  ;;  %1311 = vmatprep.subr.bf16.mxu0 %v2540_v28  ;;  %v2618_v14 = vld [vmem:[#allocation6 + $0x360] ss:$8 sps:$4 sm:$0xff]   ;;  %v2635_v15 = vld [vmem:[#allocation6 + $0x354] ss:$8 sps:$4 sm:$0xff]   ;;  %v2615_v18 = vld [vmem:[#allocation6 + $0x250] ss:$8 sps:$4 sm:$0xff]  }
  0x6b   : > { %1424 = vmatprep.subr.bf16.mxu1 %v2542_v29  ;;  %v2614_v17 = vld [vmem:[%s3094_s13 + $0x40] ss:$28 sps:$4 sm:$0xff]   ;;  %v2623_v19 = vld [vmem:[#allocation6 + $0x244] ss:$8 sps:$4 sm:$0xff]   ;;  %v2633_v22 = vld [vmem:[#allocation6 + $0x350] ss:$8 sps:$4 sm:$0xff]  }
  0x6c   : > { %v2626_v21 = vld [vmem:[%s3094_s13 + $0x7c] ss:$28 sps:$4 sm:$0xff]   ;;  %v2650_v23 = vld [vmem:[#allocation6 + $0x344] ss:$8 sps:$4 sm:$0xff]   ;;  %v2621_v24 = vld [vmem:[#allocation6 + $0x240] ss:$8 sps:$4 sm:$0xff]  }
  0x6d   : > { %1312 = vmatpush1.bf16.msra.mxu0 %v2544_v30  ;;  %v2628_v25 = vld [vmem:[%s3094_s13 + $0x70] ss:$28 sps:$4 sm:$0xff]   ;;  %v2632_v26 = vld [vmem:[#allocation6 + $0x234] ss:$8 sps:$4 sm:$0xff]   ;;  %v2648_v28 = vld [vmem:[#allocation6 + $0x340] ss:$8 sps:$4 sm:$0xff]  }
  0x6e   : > { %1425 = vmatpush1.bf16.msra.mxu1 %v2545_v31  ;;  %1313 = vmatprep.subr.bf16.mxu0 %v2546_v32  ;;  %v2629_v27 = vld [vmem:[%s3094_s13 + $0x78] ss:$28 sps:$4 sm:$0xff]   ;;  %v2638_v30 = vld [vmem:[#allocation6 + $0x224] ss:$8 sps:$4 sm:$0xff]   ;;  %s1937_s7 = sld [smem:[#allocation2]]  ;;  %s2430_s8 = sshll.u32 %s2996_s4, 4 }
  0x6f   : > { %1426 = vmatprep.subr.bf16.mxu1 %v2548_v33  ;;  %v2630_v29 = vld [vmem:[#allocation6 + $0x230] ss:$8 sps:$4 sm:$0xff]   ;;  %v2639_v31 = vld [vmem:[%s3094_s13 + $0xac] ss:$28 sps:$4 sm:$0xff]   ;;  %v2665_v33 = vld [vmem:[#allocation6 + $0x334] ss:$8 sps:$4 sm:$0xff]   ;;  %s3494_s24 = scalar_lea.hbm %s3535_s5, %s2430_s8 }
  0x70   : > { %v2641_v32 = vld [vmem:[%s3094_s13 + $0xb4] ss:$28 sps:$4 sm:$0xff]   ;;  %v2659_v49 = vld [vmem:[%s3094_s13 + $0xe8] ss:$28 sps:$4 sm:$0xff]   ;;  %s258_s17 = scalar_lea.vmem [#allocation8], %s3090_s10  ;;  %s2165_s30 = scalar_lea.sflag [#allocation5], %s3090_s10 }
  0x71   : > { %1314 = vmatpush2.bf16.msra.mxu0 %v2550_v34  ;;  %v2663_v34 = vld [vmem:[#allocation6 + $0x330] ss:$8 sps:$4 sm:$0xff]   ;;  %s2177_s16 = sshll.u32 %s258_s17, 4  ;;  %p3571_p10 = scmp.ne.s32.totalorder %s3549_s15, 0  ;;  %s2178_s16 = int_to_ptr.vmem [resolvable:$true] %s2177_s16 }
  0x72   : > { %1427 = vmatpush2.bf16.msra.mxu1 %v2551_v35  ;;  %1315 = vmatprep.subr.bf16.mxu0 %v2552_v36  ;;  %v2636_v35 = vld [vmem:[#allocation6 + $0x220] ss:$8 sps:$4 sm:$0xff]   ;;  %v2680_v36 = vld [vmem:[#allocation6 + $0x324] ss:$8 sps:$4 sm:$0xff]   ;;  %v2660_v51 = vld [vmem:[#allocation6 + $0x2f0] ss:$8 sps:$4 sm:$0xff]  }
  0x73   : > { %1428 = vmatprep.subr.bf16.mxu1 %v2554_v37  ;;  %v2647_v37 = vld [vmem:[#allocation6 + $0x214] ss:$8 sps:$4 sm:$0xff]   ;;  %s2864_s9 = scalar_lea.vmem %s2178_s16, 16  ;;  %s2941_s4 = smov [#allocation8]  }
  0x74   : > { %p2865_p3 = scmp.ne.s32.totalorder %s2178_s16, %s2864_s9  ;;  %s2868_s11 = sshll.u32 %s2941_s4, 4  ;;  %s2869_s11 = int_to_ptr.vmem [resolvable:$false] %s2868_s11 }
  0x75   : > { %1316 = vmatpush2.bf16.msra.mxu0 %v2556_v38  ;;  %v2643_v38 = vld [vmem:[%s3094_s13 + $0xa8] ss:$28 sps:$4 sm:$0xff]   ;;  %s2870_s12 = scalar_lea.vmem %s2869_s11, 32  ;;  %p2871_p12 = scmp.lt.s32.totalorder %s2178_s16, %s2869_s11 }
  0x76   : > { %1429 = vmatpush2.bf16.msra.mxu1 %v2557_v39  ;;  %1317 = vmatprep.subr.bf16.mxu0 %v2558_v40  ;;  %v2644_v39 = vld [vmem:[%s3094_s13 + $0xb0] ss:$28 sps:$4 sm:$0xff]   ;;  %p2866_p7 = pnand %p2865_p3, %p3571_p10  ;;  %p2872_p2 = scmp.lt.s32.totalorder %s2870_s12, %s2864_s9 }
  0x77   : > { %1430 = vmatprep.subr.bf16.mxu1 %v2560_v41  ;;  %v2645_v40 = vld [vmem:[#allocation6 + $0x210] ss:$8 sps:$4 sm:$0xff]   ;;  %v2653_v41 = vld [vmem:[#allocation6 + $0x204] ss:$8 sps:$4 sm:$0xff]  }
  0x78   : > { %p2867_p11 = pneg %p2866_p7  ;;  %p2873_p13 = por %p2872_p2, %p2871_p12 }
  0x79   : > { %1318 = vmatpush2.bf16.msra.mxu0 %v2562_v42  ;;  %v2654_v42 = vld [vmem:[%s3094_s13 + $0xe4] ss:$28 sps:$4 sm:$0xff]  }
  0x7a   : > { %1431 = vmatpush2.bf16.msra.mxu1 %v2563_v43  ;;  %1319 = vmatprep.subr.bf16.mxu0 %v2564_v44  ;;  %v2656_v43 = vld [vmem:[%s3094_s13 + $0xec] ss:$28 sps:$4 sm:$0xff]   ;;  %p2874_p0 = pnand %p2873_p13, %p2867_p11 }
  0x7b   : > { %1432 = vmatprep.subr.bf16.mxu1 %v2566_v45  ;;  %v2678_v44 = vld [vmem:[#allocation6 + $0x320] ss:$8 sps:$4 sm:$0xff]   ;;  %v2695_v45 = vld [vmem:[#allocation6 + $0x314] ss:$8 sps:$4 sm:$0xff]  }
  0x7d   : > { %1320 = vmatpush2.bf16.msra.mxu0 %v2568_v46  ;;  %v2651_v46 = vld [vmem:[#allocation6 + $0x200] ss:$8 sps:$4 sm:$0xff]  }
  0x7e   : > { %1433 = vmatpush2.bf16.msra.mxu1 %v2569_v47  ;;  %1321 = vmatprep.subr.bf16.mxu0 %v2570_v48  ;;  %v2658_v47 = vld [vmem:[%s3094_s13 + $0xe0] ss:$28 sps:$4 sm:$0xff]  }
  0x7f   : > { %1434 = vmatprep.subr.bf16.mxu1 %v2572_v50  ;;  %v2662_v48 = vld [vmem:[#allocation6 + $0x2f4] ss:$8 sps:$4 sm:$0xff]   ;;  %v2693_v50 = vld [vmem:[#allocation6 + $0x310] ss:$8 sps:$4 sm:$0xff]  }
  0x81   : > { %1322 = vmatpush2.bf16.msra.mxu0 %v2574_v52  ;;  %v2668_v52 = vld [vmem:[#allocation6 + $0x2e4] ss:$8 sps:$4 sm:$0xff]  }
  0x82   : > { %1435 = vmatpush2.bf16.msra.mxu1 %v2575_v53  ;;  %1323 = vmatprep.subr.bf16.mxu0 %v2576_v54  ;;  %v2669_v53 = vld [vmem:[%s3094_s13 + $0x11c] ss:$28 sps:$4 sm:$0xff]   ;;  %v2671_v54 = vld [vmem:[%s3094_s13 + $0x124] ss:$28 sps:$4 sm:$0xff]  }
  0x83   : > { %1436 = vmatprep.subr.bf16.mxu1 %v2578_v55  ;;  %v2710_v55 = vld [vmem:[#allocation6 + $0x304] ss:$8 sps:$4 sm:$0xff]  }
  0x85   : > { %1324 = vmatpush2.bf16.msra.mxu0 %v2580_v56  ;;  %v2708_v56 = vld [vmem:[#allocation6 + $0x300] ss:$8 sps:$4 sm:$0xff]  }
  0x86   : > { %1437 = vmatpush2.bf16.msra.mxu1 %v2581_v57  ;;  %1325 = vmatprep.subr.bf16.mxu0 %v2582_v58  ;;  %v2666_v57 = vld [vmem:[#allocation6 + $0x2e0] ss:$8 sps:$4 sm:$0xff]   ;;  %v2673_v58 = vld [vmem:[%s3094_s13 + $0x118] ss:$28 sps:$4 sm:$0xff]  }
  0x87   : > { %1438 = vmatprep.subr.bf16.mxu1 %v2584_v59  ;;  %v2674_v59 = vld [vmem:[%s3094_s13 + $0x120] ss:$28 sps:$4 sm:$0xff]  }
  0x89   : > { %1326 = vmatpush2.bf16.msra.mxu0 %v2586_v60  ;;  %v2677_v60 = vld [vmem:[#allocation6 + $0x2d4] ss:$8 sps:$4 sm:$0xff]  }
  0x8a   : > { %1439 = vmatpush2.bf16.msra.mxu1 %v2587_v61  ;;  %1327 = vmatprep.subr.bf16.mxu0 %v2588_v62  ;;  %v2675_v61 = vld [vmem:[#allocation6 + $0x2d0] ss:$8 sps:$4 sm:$0xff]   ;;  %v2683_v62 = vld [vmem:[#allocation6 + $0x2c4] ss:$8 sps:$4 sm:$0xff]  }
  0x8b   : > { %1440 = vmatprep.subr.bf16.mxu1 %v2590_v63  ;;  %v2684_v63 = vld [vmem:[%s3094_s13 + $0x154] ss:$28 sps:$4 sm:$0xff]  }
  0x8d   : > { %1328 = vmatpush2.bf16.msra.mxu0 %v2592_v0  ;;  %v2686_v0 = vld [vmem:[%s3094_s13 + $0x15c] ss:$28 sps:$4 sm:$0xff]  }
  0x8e   : > { %1441 = vmatpush2.bf16.msra.mxu1 %v2593_v1  ;;  %1523 = vmatprep.subr.bf16.mxu0 %v2602_v2  ;;  %v2681_v1 = vld [vmem:[#allocation6 + $0x2c0] ss:$8 sps:$4 sm:$0xff]   ;;  %v2688_v2 = vld [vmem:[%s3094_s13 + $0x150] ss:$28 sps:$4 sm:$0xff]  }
  0x8f   : > { %1636 = vmatprep.subr.bf16.mxu1 %v2605_v3  ;;  %v2692_v3 = vld [vmem:[#allocation6 + $0x2b4] ss:$8 sps:$4 sm:$0xff]  }
  0x90   : > { %1330 = vmatmul.mubr.bf16.vlgmr.msra.gmra.mxu0 %v2594_v4  ;;  %v2689_v4 = vld [vmem:[%s3094_s13 + $0x158] ss:$28 sps:$4 sm:$0xff]  }
  0x91   : > { %1443 = vmatmul.mubr.bf16.vlgmr.msra.gmra.mxu1 %v2597_v5  ;;  %1524 = vmatpush1.bf16.msra.mxu0 %v2600_v6  ;;  %v2690_v5 = vld [vmem:[#allocation6 + $0x2b0] ss:$8 sps:$4 sm:$0xff]   ;;  %v2699_v6 = vld [vmem:[%s3094_s13 + $0x18c] ss:$28 sps:$4 sm:$0xff]  }
  0x92   : > { %1637 = vmatpush1.bf16.msra.mxu1 %v2603_v7  ;;  %1525 = vmatprep.subr.bf16.mxu0 %v2608_v8  ;;  %v2698_v7 = vld [vmem:[#allocation6 + $0x2a4] ss:$8 sps:$4 sm:$0xff]   ;;  %v2701_v8 = vld [vmem:[%s3094_s13 + $0x194] ss:$28 sps:$4 sm:$0xff]  }
  0x93   : > { %1339 = vmatprep.mubr.bf16.mxu0 %v2609_v9  ;;  %1452 = vmatprep.mubr.bf16.mxu1 %v2611_v10  ;;  %v2696_v9 = vld [vmem:[#allocation6 + $0x2a0] ss:$8 sps:$4 sm:$0xff]   ;;  %v2707_v10 = vld [vmem:[#allocation6 + $0x294] ss:$8 sps:$4 sm:$0xff]  }
  0x94   : > { %1638 = vmatprep.subr.bf16.mxu1 %v2620_v11  ;;  %v2703_v11 = vld [vmem:[%s3094_s13 + $0x188] ss:$28 sps:$4 sm:$0xff]  }
  0x95   : > { %1526 = vmatpush1.bf16.msra.mxu0 %v2606_v12  ;;  %v2704_v12 = vld [vmem:[%s3094_s13 + $0x190] ss:$28 sps:$4 sm:$0xff]  }
  0x96   : > { %1639 = vmatpush1.bf16.msra.mxu1 %v2618_v14  ;;  %1527 = vmatprep.subr.bf16.mxu0 %v2617_v13  ;;  %v2705_v13 = vld [vmem:[#allocation6 + $0x290] ss:$8 sps:$4 sm:$0xff]  }
  0x97   : > { %1640 = vmatprep.subr.bf16.mxu1 %v2635_v15  ;;  %v2716_v14 = vld [vmem:[%s3094_s13 + $0x14] ss:$28 sps:$4 sm:$0xff]   ;;  %v2713_v15 = vld [vmem:[#allocation6 + $0x284] ss:$8 sps:$4 sm:$0xff]  }
  0x98   : > { %1340 = vmatmul.mubr.bf16.gmra.mxu0 %v2613_v16  ;;  %v2711_v16 = vld [vmem:[#allocation6 + $0x280] ss:$8 sps:$4 sm:$0xff]  }
  0x99   : > { %1453 = vmatmul.mubr.bf16.gmra.mxu1 %v2614_v17  ;;  %1528 = vmatpush1.bf16.msra.mxu0 %v2615_v18  ;;  %v2940_v17 = vmov 0   ;;  %v2714_v18 = vld [vmem:[%s3094_s13 + $0x10] ss:$28 sps:$4 sm:$0xff]  }
  0x9a   : > { %1349 = vmatprep.mubr.bf16.mxu0 %v2624_v20  ;;  %1529 = vmatprep.subr.bf16.mxu0 %v2623_v19  ;;  %v2717_v19 = vld [vmem:[%s3094_s13 + $0x18] ss:$28 sps:$4 sm:$0xff]   ;;  %v2718_v20 = vld [vmem:[%s3094_s13 + $0x4c] ss:$28 sps:$4 sm:$0xff]  }
  0x9b   : > { %1462 = vmatprep.mubr.bf16.mxu1 %v2626_v21  ;;  %1641 = vmatpush1.bf16.msra.mxu1 %v2633_v22  ;;  %v2720_v21 = vld [vmem:[%s3094_s13 + $0x48] ss:$28 sps:$4 sm:$0xff]   ;;  %v2721_v22 = vld [vmem:[%s3094_s13 + $0x50] ss:$28 sps:$4 sm:$0xff]  }
  0x9c   : > { %1642 = vmatprep.subr.bf16.mxu1 %v2650_v23  ;;  %v2722_v23 = vld [vmem:[%s3094_s13 + $0x84] ss:$28 sps:$4 sm:$0xff]  }
  0x9d   : > { %1530 = vmatpush1.bf16.msra.mxu0 %v2621_v24  ;;  %v2724_v24 = vld [vmem:[%s3094_s13 + $0x80] ss:$28 sps:$4 sm:$0xff]  }
  0x9e   : > { %1531 = vmatprep.subr.bf16.mxu0 %v2632_v26  ;;  %v2726_v26 = vld [vmem:[%s3094_s13 + $0xbc] ss:$28 sps:$4 sm:$0xff]  }
  0x9f   : > { %1643 = vmatpush1.bf16.msra.mxu1 %v2648_v28  ;;  %v2729_v28 = vld [vmem:[%s3094_s13 + $0xc0] ss:$28 sps:$4 sm:$0xff]  }
  0xa0   : > { %1350 = vmatmul.mubr.bf16.gmra.mxu0 %v2628_v25  ;;  %1644 = vmatprep.subr.bf16.mxu1 %v2665_v33  ;;  %v2725_v25 = vld [vmem:[%s3094_s13 + $0x88] ss:$28 sps:$4 sm:$0xff]  }
  0xa1   : > { %1463 = vmatmul.mubr.bf16.gmra.mxu1 %v2629_v27  ;;  %1532 = vmatpush1.bf16.msra.mxu0 %v2630_v29  ;;  %v2728_v27 = vld [vmem:[%s3094_s13 + $0xb8] ss:$28 sps:$4 sm:$0xff]   ;;  %v2736_v33 = vld [vmem:[%s3094_s13 + $0x128] ss:$28 sps:$4 sm:$0xff]  }
  0xa2   : > { %1359 = vmatprep.mubr.bf16.mxu0 %v2639_v31  ;;  %1533 = vmatprep.subr.bf16.mxu0 %v2638_v30  ;;  %v2730_v29 = vld [vmem:[%s3094_s13 + $0xf4] ss:$28 sps:$4 sm:$0xff]  }
  0xa3   : > { %1472 = vmatprep.mubr.bf16.mxu1 %v2641_v32  ;;  %1645 = vmatpush1.bf16.msra.mxu1 %v2663_v34  ;;  %v2732_v30 = vld [vmem:[%s3094_s13 + $0xf0] ss:$28 sps:$4 sm:$0xff]   ;;  %v2733_v31 = vld [vmem:[%s3094_s13 + $0xf8] ss:$28 sps:$4 sm:$0xff]  }
  0xa4   : > { %1646 = vmatprep.subr.bf16.mxu1 %v2680_v36  ;;  %v2734_v32 = vld [vmem:[%s3094_s13 + $0x12c] ss:$28 sps:$4 sm:$0xff]   ;;  %v2740_v36 = vld [vmem:[%s3094_s13 + $0x160] ss:$28 sps:$4 sm:$0xff]  }
  0xa5   : > { %1534 = vmatpush1.bf16.msra.mxu0 %v2636_v35  ;;  %v2737_v34 = vld [vmem:[%s3094_s13 + $0x130] ss:$28 sps:$4 sm:$0xff]   ;;  %v2738_v35 = vld [vmem:[%s3094_s13 + $0x164] ss:$28 sps:$4 sm:$0xff]  }
  0xa6   : > { %1535 = vmatprep.subr.bf16.mxu0 %v2647_v37  ;;  %v2741_v37 = vld [vmem:[%s3094_s13 + $0x168] ss:$28 sps:$4 sm:$0xff]  }
  0xa7   : > { %1647 = vmatpush1.bf16.msra.mxu1 %v2678_v44  ;;  %v3167_v44 = vld [vmem:[%s3532_s2] sm:$0x3] }
  0xa8   : > { %1360 = vmatmul.mubr.bf16.gmra.mxu0 %v2643_v38  ;;  %1648 = vmatprep.subr.bf16.mxu1 %v2695_v45  ;;  %v2742_v38 = vld [vmem:[%s3094_s13 + $0x19c] ss:$28 sps:$4 sm:$0xff]  }
  0xa9   : > { %1473 = vmatmul.mubr.bf16.gmra.mxu1 %v2644_v39  ;;  %1536 = vmatpush1.bf16.msra.mxu0 %v2645_v40  ;;  %v2744_v39 = vld [vmem:[%s3094_s13 + $0x198] ss:$28 sps:$4 sm:$0xff]   ;;  %v2745_v40 = vld [vmem:[%s3094_s13 + $0x1a0] ss:$28 sps:$4 sm:$0xff]  }
  0xaa   : > { %1369 = vmatprep.mubr.bf16.mxu0 %v2654_v42  ;;  %1537 = vmatprep.subr.bf16.mxu0 %v2653_v41  ;;  %v3540_v41 = vlaneseq }
  0xab   : > { %1482 = vmatprep.mubr.bf16.mxu1 %v2656_v43  ;;  %1649 = vmatpush1.bf16.msra.mxu1 %v2693_v50 }
  0xac   : > { %1650 = vmatprep.subr.bf16.mxu1 %v2710_v55  ;;  %v3161_v42 = vshrl.u32 %v3540_v41, 7 }
  0xad   : > { %1538 = vmatpush1.bf16.msra.mxu0 %v2651_v46 }
  0xae   : > { %1539 = vmatprep.subr.bf16.mxu0 %v2662_v48  ;;  %3555 = vst [vmem:[#allocation12_spill] sm:$0xff] %v3161_v42  ;;  %v3541_v43 = vsub.s32 0, %v3161_v42 }
  0xaf   : > { %1651 = vmatpush1.bf16.msra.mxu1 %v2708_v56 }
  0xb0   : > { %1370 = vmatmul.mubr.bf16.gmra.mxu0 %v2658_v47  ;;  %v3172_v45 = vrot.slane %v3167_v44, %v3541_v43 }
  0xb1   : > { %1483 = vmatmul.mubr.bf16.gmra.mxu1 %v2659_v49  ;;  %1540 = vmatpush2.bf16.msra.mxu0 %v2660_v51 }
  0xb2   : > { %1379 = vmatprep.mubr.bf16.mxu0 %v2669_v53  ;;  %1541 = vmatprep.subr.bf16.mxu0 %v2668_v52 }
  0xb3   : > { %1492 = vmatprep.mubr.bf16.mxu1 %v2671_v54 }
  0xb5   : > { %1542 = vmatpush2.bf16.msra.mxu0 %v2666_v57 }
  0xb6   : > { %1543 = vmatprep.subr.bf16.mxu0 %v2677_v60 }
  0xb8   : > { %1380 = vmatmul.mubr.bf16.gmra.mxu0 %v2673_v58 }
  0xb9   : > { %1493 = vmatmul.mubr.bf16.gmra.mxu1 %v2674_v59  ;;  %1544 = vmatpush2.bf16.msra.mxu0 %v2675_v61 }
  0xba   : > { %1389 = vmatprep.mubr.bf16.mxu0 %v2684_v63  ;;  %1545 = vmatprep.subr.bf16.mxu0 %v2683_v62 }
  0xbb   : > { %1502 = vmatprep.mubr.bf16.mxu1 %v2686_v0 }
  0xbd   : > { %1546 = vmatpush2.bf16.msra.mxu0 %v2681_v1 }
  0xbe   : > { %1547 = vmatprep.subr.bf16.mxu0 %v2692_v3 }
  0xc0   : > { %1390 = vmatmul.mubr.bf16.gmra.mxu0 %v2688_v2 }
  0xc1   : > { %1503 = vmatmul.mubr.bf16.gmra.mxu1 %v2689_v4  ;;  %1548 = vmatpush2.bf16.msra.mxu0 %v2690_v5 }
  0xc2   : > { %1399 = vmatprep.mubr.bf16.mxu0 %v2699_v6  ;;  %1549 = vmatprep.subr.bf16.mxu0 %v2698_v7 }
  0xc3   : > { %1512 = vmatprep.mubr.bf16.mxu1 %v2701_v8 }
  0xc5   : > { %1550 = vmatpush2.bf16.msra.mxu0 %v2696_v9 }
  0xc6   : > { %1551 = vmatprep.subr.bf16.mxu0 %v2707_v10 }
  0xc8   : > { %1400 = vmatmul.mubr.bf16.gmra.mxu0 %v2703_v11 }
  0xc9   : > { %1513 = vmatmul.mubr.bf16.gmra.mxu1 %v2704_v12  ;;  %1552 = vmatpush2.bf16.msra.mxu0 %v2705_v13 }
  0xca   : > { %1555 = vmatprep.mubr.bf16.mxu0 %v2716_v14  ;;  %1553 = vmatprep.subr.bf16.mxu0 %v2713_v15 }
  0xcb   : > { %1668 = vmatprep.mubr.bf16.mxu1 %v2940_v17 }
  0xcd   : > { %1554 = vmatpush2.bf16.msra.mxu0 %v2711_v16 }
  0xd0   : > { %1556 = vmatmul.mubr.bf16.vlgmr.msra.gmra.mxu0 %v2714_v18 }
  0xd1   : > { %1669 = vmatmul.mubr.bf16.vlgmr.msra.gmra.mxu1 %v2717_v19  ;;  %1565 = vmatprep.mubr.bf16.mxu0 %v2718_v20 }
  0xd2   : > { %1678 = vmatprep.mubr.bf16.mxu1 %v2940_v17 }
  0xd8   : > { %1566 = vmatmul.mubr.bf16.gmra.mxu0 %v2720_v21 }
  0xd9   : > { %1679 = vmatmul.mubr.bf16.gmra.mxu1 %v2721_v22  ;;  %1575 = vmatprep.mubr.bf16.mxu0 %v2722_v23 }
  0xda   : > { %1688 = vmatprep.mubr.bf16.mxu1 %v2940_v17 }
  0xe0   : > { %1576 = vmatmul.mubr.bf16.gmra.mxu0 %v2724_v24 }
  0xe1   : > { %1689 = vmatmul.mubr.bf16.gmra.mxu1 %v2725_v25  ;;  %1585 = vmatprep.mubr.bf16.mxu0 %v2726_v26 }
  0xe2   : > { %1698 = vmatprep.mubr.bf16.mxu1 %v2940_v17 }
  0xe8   : > { %1586 = vmatmul.mubr.bf16.gmra.mxu0 %v2728_v27 }
  0xe9   : > { %1699 = vmatmul.mubr.bf16.gmra.mxu1 %v2729_v28  ;;  %1595 = vmatprep.mubr.bf16.mxu0 %v2730_v29 }
  0xea   : > { %1708 = vmatprep.mubr.bf16.mxu1 %v2940_v17 }
  0xf0   : > { %1596 = vmatmul.mubr.bf16.gmra.mxu0 %v2732_v30 }
  0xf1   : > { %1709 = vmatmul.mubr.bf16.gmra.mxu1 %v2733_v31  ;;  %1605 = vmatprep.mubr.bf16.mxu0 %v2734_v32 }
  0xf2   : > { %1718 = vmatprep.mubr.bf16.mxu1 %v2940_v17 }
  0xf8   : > { %1606 = vmatmul.mubr.bf16.gmra.mxu0 %v2736_v33 }
  0xf9   : > { %1719 = vmatmul.mubr.bf16.gmra.mxu1 %v2737_v34  ;;  %1615 = vmatprep.mubr.bf16.mxu0 %v2738_v35 }
  0xfa   : > { %1728 = vmatprep.mubr.bf16.mxu1 %v2940_v17 }
 0x100   : > { %1616 = vmatmul.mubr.bf16.gmra.mxu0 %v2740_v36 }
 0x101   : > { %1729 = vmatmul.mubr.bf16.gmra.mxu1 %v2741_v37  ;;  %1625 = vmatprep.mubr.bf16.mxu0 %v2742_v38 }
 0x102   : > { %1738 = vmatprep.mubr.bf16.mxu1 %v2940_v17 }
 0x108   : > { %1626 = vmatmul.mubr.bf16.gmra.mxu0 %v2744_v39 }
 0x109   : > { %1739 = vmatmul.mubr.bf16.gmra.mxu1 %v2745_v40 }
 0x150   : > { %v1331_v46 = vpop.f32.mrf.mxu0 }
 0x151   : > { %v1444_v47 = vpop.f32.mrf.mxu1  ;;  %v1332_v48 = vadd.f32 %v1331_v46, %v3172_v45 }
 0x152   : > { %v3175_v49 = vpop.f32.mrf.mxu0 }
 0x153   : > { %v3177_v50 = vpop.f32.mrf.mxu1  ;;  %v3179_v51 = vadd.f32 %v1444_v47, %v1332_v48 }
 0x154   : > { %v1335_v52 = vpop.f32.mrf.mxu0 }
 0x155   : > { %v1448_v53 = vpop.f32.mrf.mxu1  ;;  %v1336_v54 = vadd.f32 %v1335_v52, %v3172_v45 }
 0x156   : > { %v3182_v55 = vpop.f32.mrf.mxu0 }
 0x157   : > { %v3184_v56 = vpop.f32.mrf.mxu1  ;;  %v3186_v57 = vadd.f32 %v1448_v53, %v1336_v54 }
 0x158   : > { %v1341_v58 = vpop.f32.mrf.mxu0 }
 0x159   : > { %v1454_v59 = vpop.f32.mrf.mxu1  ;;  %v1342_v60 = vadd.f32 %v1341_v58, %v3172_v45 }
 0x15a   : > { %v3189_v61 = vpop.f32.mrf.mxu0 }
 0x15b   : > { %v3191_v62 = vpop.f32.mrf.mxu1  ;;  %v3193_v63 = vadd.f32 %v1454_v59, %v1342_v60 }
 0x15c   : > { %v1345_v0 = vpop.f32.mrf.mxu0 }
 0x15d   : > { %v1458_v1 = vpop.f32.mrf.mxu1  ;;  %v1346_v2 = vadd.f32 %v1345_v0, %v3172_v45 }
 0x15e   : > { %v3196_v3 = vpop.f32.mrf.mxu0 }
 0x15f   : > { %v3198_v4 = vpop.f32.mrf.mxu1  ;;  %v3200_v5 = vadd.f32 %v1458_v1, %v1346_v2 }
 0x160   : > { %v1351_v6 = vpop.f32.mrf.mxu0 }
 0x161   : > { %v1464_v7 = vpop.f32.mrf.mxu1  ;;  %v1352_v8 = vadd.f32 %v1351_v6, %v3172_v45 }
 0x162   : > { %v3203_v9 = vpop.f32.mrf.mxu0 }
 0x163   : > { %v3205_v10 = vpop.f32.mrf.mxu1  ;;  %v3207_v11 = vadd.f32 %v1464_v7, %v1352_v8 }
 0x164   : > { %v1355_v12 = vpop.f32.mrf.mxu0 }
 0x165   : > { %v1468_v13 = vpop.f32.mrf.mxu1  ;;  %v1356_v14 = vadd.f32 %v1355_v12, %v3172_v45 }
 0x166   : > { %v3210_v15 = vpop.f32.mrf.mxu0 }
 0x167   : > { %v3212_v16 = vpop.f32.mrf.mxu1  ;;  %v3214_v17 = vadd.f32 %v1468_v13, %v1356_v14 }
 0x168   : > { %v1361_v18 = vpop.f32.mrf.mxu0 }
 0x169   : > { %v1474_v19 = vpop.f32.mrf.mxu1  ;;  %v1362_v20 = vadd.f32 %v1361_v18, %v3172_v45 }
 0x16a   : > { %v3217_v21 = vpop.f32.mrf.mxu0 }
 0x16b   : > { %v3219_v22 = vpop.f32.mrf.mxu1  ;;  %v3221_v23 = vadd.f32 %v1474_v19, %v1362_v20 }
 0x16c   : > { %v1365_v24 = vpop.f32.mrf.mxu0 }
 0x16d   : > { %v1478_v25 = vpop.f32.mrf.mxu1  ;;  %v1366_v26 = vadd.f32 %v1365_v24, %v3172_v45  ;;  %v445_v24 = vsub.s32 1, %v3161_v42 }
 0x16e   : > { %v3224_v27 = vpop.f32.mrf.mxu0 }
 0x16f   : > { %v3226_v28 = vpop.f32.mrf.mxu1  ;;  %v3228_v29 = vadd.f32 %v1478_v25, %v1366_v26 }
 0x170   : > { %v1371_v30 = vpop.f32.mrf.mxu0 }
 0x171   : > { %v1484_v31 = vpop.f32.mrf.mxu1  ;;  %v1372_v32 = vadd.f32 %v1371_v30, %v3172_v45 }
 0x172   : > { %v3231_v33 = vpop.f32.mrf.mxu0 }
 0x173   : > { %v3233_v34 = vpop.f32.mrf.mxu1  ;;  %v3235_v35 = vadd.f32 %v1484_v31, %v1372_v32 }
 0x174   : > { %v1375_v36 = vpop.f32.mrf.mxu0 }
 0x175   : > { %v1488_v37 = vpop.f32.mrf.mxu1  ;;  %v1376_v38 = vadd.f32 %v1375_v36, %v3172_v45 }
 0x176   : > { %v3238_v39 = vpop.f32.mrf.mxu0 }
 0x177   : > { %v3240_v40 = vpop.f32.mrf.mxu1  ;;  %v3242_v46 = vadd.f32 %v1488_v37, %v1376_v38  ;;  %v3278_v37 = vrot.slane %v3167_v44, %v445_v24 }
 0x178   : > { %v1381_v47 = vpop.f32.mrf.mxu0 }
 0x179   : > { %v1494_v48 = vpop.f32.mrf.mxu1  ;;  %v1382_v52 = vadd.f32 %v1381_v47, %v3172_v45 }
 0x17a   : > { %v3245_v53 = vpop.f32.mrf.mxu0 }
 0x17b   : > { %v3247_v54 = vpop.f32.mrf.mxu1  ;;  %v3249_v58 = vadd.f32 %v1494_v48, %v1382_v52 }
 0x17c   : > { %v1385_v59 = vpop.f32.mrf.mxu0 }
 0x17d   : > { %v1498_v60 = vpop.f32.mrf.mxu1  ;;  %v1386_v0 = vadd.f32 %v1385_v59, %v3172_v45  ;;  %v1334_v59 = vadd.f32 %v3175_v49, %v3278_v37  ;;  %v1845_v49 = vld [vmem:[%s3533_s3] sm:$0x3] }
 0x17e   : > { %v3252_v1 = vpop.f32.mrf.mxu0 }
 0x17f   : > { %v3254_v2 = vpop.f32.mrf.mxu1  ;;  %v3256_v6 = vadd.f32 %v1498_v60, %v1386_v0 }
 0x180   : > { %v1391_v7 = vpop.f32.mrf.mxu0 }
 0x181   : > { %v1504_v8 = vpop.f32.mrf.mxu1  ;;  %v1392_v12 = vadd.f32 %v1391_v7, %v3172_v45  ;;  %v1338_v7 = vadd.f32 %v3182_v55, %v3278_v37 }
 0x182   : > { %v3259_v13 = vpop.f32.mrf.mxu0 }
 0x183   : > { %v3261_v14 = vpop.f32.mrf.mxu1  ;;  %v3263_v18 = vadd.f32 %v1504_v8, %v1392_v12  ;;  %v1447_v12 = vadd.f32 %v3177_v50, %v1334_v59 }
 0x184   : > { %v1395_v19 = vpop.f32.mrf.mxu0 }
 0x185   : > { %v1508_v20 = vpop.f32.mrf.mxu1  ;;  %v1396_v25 = vadd.f32 %v1395_v19, %v3172_v45 }
 0x186   : > { %v3267_v26 = vpop.f32.mrf.mxu0 }
 0x187   : > { %v3269_v30 = vpop.f32.mrf.mxu1  ;;  %v3271_v31 = vadd.f32 %v1508_v20, %v1396_v25 }
 0x188   : > { %v3273_v32 = vpop.f32.mrf.mxu0 }
 0x189   : > { %3556 = vst [vmem:[#allocation13_spill] sm:$0xff] %v3271_v31  ;;  %v3275_v36 = vpop.f32.mrf.mxu1 }
 0x18a   : > { %v3280_v38 = vpop.f32.mrf.mxu0 }
 0x18b   : > { %v3282_v47 = vpop.f32.mrf.mxu1 }
 0x18c   : > { %3557 = vst [vmem:[#allocation14_spill] sm:$0xff] %v3282_v47  ;;  %v3284_v48 = vpop.f32.mrf.mxu0 }
 0x18d   : > { %3558 = vst [vmem:[#allocation15_spill] sm:$0xff] %v3284_v48  ;;  %v3286_v52 = vpop.f32.mrf.mxu1 }
 0x18e   : > { %3559 = vst [vmem:[#allocation16_spill] sm:$0xff] %v3286_v52  ;;  %v3290_v60 = vpop.f32.mrf.mxu0  ;;  %v1451_v52 = vadd.f32 %v3184_v56, %v1338_v7 }
 0x18f   : > { %3560 = vst [vmem:[#allocation17_spill] sm:$0xff] %v3290_v60  ;;  %v3292_v0 = vpop.f32.mrf.mxu1 }
 0x190   : > { %3561 = vst [vmem:[#allocation18_spill] sm:$0xff] %v3292_v0  ;;  %v1557_v44 = vpop.f32.mrf.mxu0  ;;  %v1344_v0 = vadd.f32 %v3189_v61, %v3278_v37  ;;  %v1348_v61 = vadd.f32 %v3196_v3, %v3278_v37 }
 0x191   : > { %v1670_v8 = vpop.f32.mrf.mxu1  ;;  %v1558_v19 = vadd.f32 %v1557_v44, %v3179_v51 }
 0x192   : > { %v1559_v20 = vpop.f32.mrf.mxu0  ;;  %v1457_v7 = vadd.f32 %v3191_v62, %v1344_v0 }
 0x193   : > { %v1672_v25 = vpop.f32.mrf.mxu1  ;;  %v1671_v41 = vadd.f32 %v1670_v8, %v1558_v19  ;;  %v1560_v43 = vadd.f32 %v1559_v20, %v1447_v12  ;;  %v3562_v8 = vsub.s32 0, %v3161_v42  ;;  %v1354_v42 = vadd.f32 %v3203_v9, %v3278_v37 }
 0x194   : > { %v1561_v55 = vpop.f32.mrf.mxu0 }
 0x195   : > { %v1674_v60 = vpop.f32.mrf.mxu1  ;;  %vm1749_vm0 = vcmp.gt.f32.partialorder %v1671_v41, 0.0  ;;  %v1781_v48 = vmul.f32 0.01, %v1671_v41  ;;  %v1673_v50 = vadd.f32 %v1672_v25, %v1560_v43  ;;  %v1562_v51 = vadd.f32 %v1561_v55, %v3186_v57 }
 0x196   : > { %v1563_v59 = vpop.f32.mrf.mxu0  ;;  %v3307_v12 = vrot.slane %v1845_v49, %v3562_v8  ;;  %v3312_v25 = vrot.slane %v1845_v49, %v445_v24 }
 0x197   : > { %v1676_v44 = vpop.f32.mrf.mxu1  ;;  %vm1750_vm1 = vcmp.gt.f32.partialorder %v1673_v50, 0.0  ;;  %v1782_v19 = vmul.f32 0.01, %v1673_v50  ;;  %v1675_v20 = vadd.f32 %v1674_v60, %v1562_v51  ;;  %v1564_v56 = vadd.f32 %v1563_v59, %v1451_v52 }
 0x198   : > { %v1567_v47 = vpop.f32.mrf.mxu0  ;;  %v1813_v43 = vsel %vm1749_vm0, %v1671_v41, %v1781_v48  ;;  %v1461_v41 = vadd.f32 %v3198_v4, %v1348_v61 }
 0x199   : > { %v1680_v31 = vpop.f32.mrf.mxu1  ;;  %vm1751_vm2 = vcmp.gt.f32.partialorder %v1675_v20, 0.0  ;;  %v1783_v57 = vmul.f32 0.01, %v1675_v20  ;;  %v1677_v55 = vadd.f32 %v1676_v44, %v1564_v56  ;;  %v1568_v8 = vadd.f32 %v1567_v47, %v3193_v63 }
 0x19a   : > { %v1569_v60 = vpop.f32.mrf.mxu0  ;;  %v1814_v62 = vsel %vm1750_vm1, %v1673_v50, %v1782_v19  ;;  %v1857_v49 = vmul.f32 %v3307_v12, %v1813_v43  ;;  %v1467_v50 = vadd.f32 %v3205_v10, %v1354_v42 }
 0x19b   : > { %v1682_v52 = vpop.f32.mrf.mxu1  ;;  %vm1752_vm3 = vcmp.gt.f32.partialorder %v1677_v55, 0.0  ;;  %v1784_v0 = vmul.f32 0.01, %v1677_v55  ;;  %v1681_v3 = vadd.f32 %v1680_v31, %v1568_v8  ;;  %v1570_v51 = vadd.f32 %v1569_v60, %v1457_v7 }
 0x19c   : > { %v1571_v24 = vpop.f32.mrf.mxu0  ;;  %v1858_v59 = vmul.f32 %v3312_v25, %v1814_v62  ;;  %v1815_v63 = vsel %vm1751_vm2, %v1675_v20, %v1783_v57  ;;  %v1358_v8 = vadd.f32 %v3210_v15, %v3278_v37  ;;  %v1364_v62 = vadd.f32 %v3217_v21, %v3278_v37 }
 0x19d   : > { %v1684_v48 = vpop.f32.mrf.mxu1  ;;  %vm1753_vm4 = vcmp.gt.f32.partialorder %v1681_v3, 0.0  ;;  %v1785_v9 = vmul.f32 0.01, %v1681_v3  ;;  %v1683_v47 = vadd.f32 %v1682_v52, %v1570_v51  ;;  %v1572_v44 = vadd.f32 %v1571_v24, %v3200_v5 }
 0x19e   : > { %v1573_v19 = vpop.f32.mrf.mxu0  ;;  %v1889_v56 = vadd.f32 %v1858_v59, %v1857_v49  ;;  %v1816_v4 = vsel %vm1752_vm3, %v1677_v55, %v1784_v0  ;;  %v1859_v60 = vmul.f32 %v3307_v12, %v1815_v63  ;;  %v1471_v59 = vadd.f32 %v3212_v16, %v1358_v8 }
 0x19f   : > { %v1686_v31 = vpop.f32.mrf.mxu1  ;;  %vm1754_vm5 = vcmp.gt.f32.partialorder %v1683_v47, 0.0  ;;  %v1786_v7 = vmul.f32 0.01, %v1683_v47  ;;  %v1685_v61 = vadd.f32 %v1684_v48, %v1572_v44  ;;  %v1574_v43 = vadd.f32 %v1573_v19, %v1461_v41 }
 0x1a0   : > { %1890 = vadd.xlane.f32.xlu0 %v1889_v56  ;;  %v1577_v20 = vpop.f32.mrf.mxu0  ;;  %v1860_v5 = vmul.f32 %v3312_v25, %v1816_v4  ;;  %v1817_v42 = vsel %vm1753_vm4, %v1681_v3, %v1785_v9 }
 0x1a1   : > { %v1690_v57 = vpop.f32.mrf.mxu1  ;;  %vm1755_vm6 = vcmp.gt.f32.partialorder %v1685_v61, 0.0  ;;  %v1787_v10 = vmul.f32 0.01, %v1685_v61  ;;  %v1687_v52 = vadd.f32 %v1686_v31, %v1574_v43  ;;  %v1578_v55 = vadd.f32 %v1577_v20, %v3207_v11 }
 0x1a2   : > { %v1579_v0 = vpop.f32.mrf.mxu0  ;;  %v1892_v15 = vadd.f32 %v1860_v5, %v1859_v60  ;;  %v1818_v41 = vsel %vm1754_vm5, %v1683_v47, %v1786_v7  ;;  %v1861_v9 = vmul.f32 %v3307_v12, %v1817_v42  ;;  %v1477_v31 = vadd.f32 %v3219_v22, %v1364_v62 }
 0x1a3   : > { %v1692_v51 = vpop.f32.mrf.mxu1  ;;  %vm1756_vm7 = vcmp.gt.f32.partialorder %v1687_v52, 0.0  ;;  %v1788_v24 = vmul.f32 0.01, %v1687_v52  ;;  %v1691_v48 = vadd.f32 %v1690_v57, %v1578_v55  ;;  %v1580_v49 = vadd.f32 %v1579_v0, %v1467_v50 }
 0x1a4   : > { %1893 = vadd.xlane.f32.xlu0 %v1892_v15  ;;  %v1581_v3 = vpop.f32.mrf.mxu0  ;;  %v1862_v11 = vmul.f32 %v3312_v25, %v1818_v41  ;;  %v1819_v21 = vsel %vm1755_vm6, %v1685_v61, %v1787_v10  ;;  %v1368_v20 = vadd.f32 %v3224_v27, %v3278_v37 }
 0x1a5   : > { %v1694_v63 = vpop.f32.mrf.mxu1  ;;  %vm1757_vm8 = vcmp.gt.f32.partialorder %v1691_v48, 0.0  ;;  %v1789_v44 = vmul.f32 0.01, %v1691_v48  ;;  %v1693_v19 = vadd.f32 %v1692_v51, %v1580_v49  ;;  %v1582_v47 = vadd.f32 %v1581_v3, %v3214_v17 }
 0x1a6   : > { %v1583_v56 = vpop.f32.mrf.mxu0  ;;  %v1895_v4 = vadd.f32 %v1862_v11, %v1861_v9  ;;  %v1820_v16 = vsel %vm1756_vm7, %v1687_v52, %v1788_v24  ;;  %v1863_v60 = vmul.f32 %v3307_v12, %v1819_v21  ;;  %v1374_v52 = vadd.f32 %v3231_v33, %v3278_v37 }
 0x1a7   : > { %v1696_v50 = vpop.f32.mrf.mxu1  ;;  %vm1758_vm9 = vcmp.gt.f32.partialorder %v1693_v19, 0.0  ;;  %v1790_v7 = vmul.f32 0.01, %v1693_v19  ;;  %v1695_v43 = vadd.f32 %v1694_v63, %v1582_v47  ;;  %v1584_v8 = vadd.f32 %v1583_v56, %v1471_v59 }
 0x1a8   : > { %1896 = vadd.xlane.f32.xlu1 %v1895_v4  ;;  %v1587_v61 = vpop.f32.mrf.mxu0  ;;  %v1864_v17 = vmul.f32 %v3312_v25, %v1820_v16  ;;  %v1821_v22 = vsel %vm1757_vm8, %v1691_v48, %v1789_v44  ;;  %v1481_v24 = vadd.f32 %v3226_v28, %v1368_v20  ;;  %v1487_v11 = vadd.f32 %v3233_v34, %v1374_v52 }
 0x1a9   : > { %v1700_v57 = vpop.f32.mrf.mxu1  ;;  %vm1759_vm10 = vcmp.gt.f32.partialorder %v1695_v43, 0.0  ;;  %v1791_v5 = vmul.f32 0.01, %v1695_v43  ;;  %v1697_v42 = vadd.f32 %v1696_v50, %v1584_v8  ;;  %v1588_v10 = vadd.f32 %v1587_v61, %v3221_v23 }
 0x1aa   : > { %v1589_v55 = vpop.f32.mrf.mxu0  ;;  %v1898_v27 = vadd.f32 %v1864_v17, %v1863_v60  ;;  %v1822_v0 = vsel %vm1758_vm9, %v1693_v19, %v1790_v7  ;;  %v1865_v59 = vmul.f32 %v3307_v12, %v1821_v22  ;;  %v1378_v50 = vadd.f32 %v3238_v39, %v3278_v37 }
 0x1ab   : > { %v1702_v62 = vpop.f32.mrf.mxu1  ;;  %vm1760_vm11 = vcmp.gt.f32.partialorder %v1697_v42, 0.0  ;;  %v1792_v51 = vmul.f32 0.01, %v1697_v42  ;;  %v1701_v15 = vadd.f32 %v1700_v57, %v1588_v10  ;;  %v1590_v41 = vadd.f32 %v1589_v55, %v1477_v31 }
 0x1ac   : > { %1899 = vadd.xlane.f32.xlu1 %v1898_v27  ;;  %v1591_v48 = vpop.f32.mrf.mxu0  ;;  %v1866_v23 = vmul.f32 %v3312_v25, %v1822_v0  ;;  %v1823_v33 = vsel %vm1759_vm10, %v1695_v43, %v1791_v5  ;;  %v1384_v61 = vadd.f32 %v3245_v53, %v3278_v37  ;;  %v1491_v10 = vadd.f32 %v3240_v40, %v1378_v50 }
 0x1ad   : > { %v1704_v49 = vpop.f32.mrf.mxu1  ;;  %vm1761_vm12 = vcmp.gt.f32.partialorder %v1701_v15, 0.0  ;;  %v1793_v3 = vmul.f32 0.01, %v1701_v15  ;;  %v1703_v63 = vadd.f32 %v1702_v62, %v1590_v41  ;;  %v1592_v9 = vadd.f32 %v1591_v48, %v3228_v29 }
 0x1ae   : > { %v1593_v21 = vpop.f32.mrf.mxu0  ;;  %v1901_v19 = vadd.f32 %v1866_v23, %v1865_v59  ;;  %v1824_v28 = vsel %vm1760_vm11, %v1697_v42, %v1792_v51  ;;  %v1867_v7 = vmul.f32 %v3307_v12, %v1823_v33  ;;  %v1388_v33 = vadd.f32 %v3252_v1, %v3278_v37 }
 0x1af   : > { %v1706_v44 = vpop.f32.mrf.mxu1  ;;  %vm1762_vm13 = vcmp.gt.f32.partialorder %v1703_v63, 0.0  ;;  %v1794_v47 = vmul.f32 0.01, %v1703_v63  ;;  %v1705_v31 = vadd.f32 %v1704_v49, %v1592_v9  ;;  %v1594_v56 = vadd.f32 %v1593_v21, %v1481_v24 }
 0x1b0   : > { %1902 = vadd.xlane.f32.xlu0 %v1901_v19  ;;  %v1597_v4 = vpop.f32.mrf.mxu0  ;;  %v1868_v29 = vmul.f32 %v3312_v25, %v1824_v28  ;;  %v1825_v34 = vsel %vm1761_vm12, %v1701_v15, %v1793_v3  ;;  %v1497_v15 = vadd.f32 %v3247_v54, %v1384_v61  ;;  %v1394_v19 = vadd.f32 %v3259_v13, %v3278_v37 }
 0x1b1   : > { %v1710_v16 = vpop.f32.mrf.mxu1  ;;  %vm1763_vm14 = vcmp.gt.f32.partialorder %v1705_v31, 0.0  ;;  %v1795_v43 = vmul.f32 0.01, %v1705_v31  ;;  %v1707_v8 = vadd.f32 %v1706_v44, %v1594_v56  ;;  %v1598_v20 = vadd.f32 %v1597_v4, %v3235_v35 }
 0x1b2   : > { %v1599_v57 = vpop.f32.mrf.mxu0  ;;  %v1904_v39 = vadd.f32 %v1868_v29, %v1867_v7  ;;  %v1826_v17 = vsel %vm1762_vm13, %v1703_v63, %v1794_v47  ;;  %v1869_v62 = vmul.f32 %v3307_v12, %v1825_v34  ;;  %v1507_v61 = vadd.f32 %v3261_v14, %v1394_v19 }
 0x1b3   : > { %v1712_v60 = vpop.f32.mrf.mxu1  ;;  %vm1764_vm15 = vcmp.gt.f32.partialorder %v1707_v8, 0.0  ;;  %v1796_v22 = vmul.f32 0.01, %v1707_v8  ;;  %v1711_v5 = vadd.f32 %v1710_v16, %v1598_v20  ;;  %v1600_v42 = vadd.f32 %v1599_v57, %v1487_v11 }
 0x1b4   : > { %1905 = vadd.xlane.f32.xlu1 %v1904_v39  ;;  %v1601_v52 = vpop.f32.mrf.mxu0  ;;  %v1870_v35 = vmul.f32 %v3312_v25, %v1826_v17  ;;  %v1827_v53 = vsel %vm1763_vm14, %v1705_v31, %v1795_v43  ;;  %v1501_v16 = vadd.f32 %v3254_v2, %v1388_v33  ;;  %v1398_v57 = vadd.f32 %v3267_v26, %v3278_v37 }
 0x1b5   : > { %v1714_v55 = vpop.f32.mrf.mxu1  ;;  %vm1765_vm0 = vcmp.gt.f32.partialorder %v1711_v5, 0.0  ;;  %v1797_v27 = vmul.f32 0.01, %v1711_v5  ;;  %v1713_v0 = vadd.f32 %v1712_v60, %v1600_v42  ;;  %v1602_v51 = vadd.f32 %v1601_v52, %v3242_v46 }
 0x1b6   : > { %v1603_v41 = vpop.f32.mrf.mxu0  ;;  %v1907_v48 = vadd.f32 %v1870_v35, %v1869_v62  ;;  %v1828_v40 = vsel %vm1764_vm15, %v1707_v8, %v1796_v22  ;;  %v1871_v9 = vmul.f32 %v3307_v12, %v1827_v53 }
 0x1b7   : > { %v1716_v24 = vpop.f32.mrf.mxu1  ;;  %vm1766_vm1 = vcmp.gt.f32.partialorder %v1713_v0, 0.0  ;;  %v1798_v49 = vmul.f32 0.01, %v1713_v0  ;;  %v1715_v59 = vadd.f32 %v1714_v55, %v1602_v51  ;;  %v1604_v23 = vadd.f32 %v1603_v41, %v1491_v10 }
 0x1b8   : > { %1908 = vadd.xlane.f32.xlu0 %v1907_v48  ;;  %v1607_v3 = vpop.f32.mrf.mxu0  ;;  %v1872_v46 = vmul.f32 %v3312_v25, %v1828_v40  ;;  %v1829_v54 = vsel %vm1765_vm0, %v1711_v5, %v1797_v27  ;;  %v1402_v10 = vadd.f32 %v3273_v32, %v3172_v45  ;;  %v1511_v27 = vadd.f32 %v3269_v30, %v1398_v57 }
 0x1b9   : > { %v1720_v63 = vpop.f32.mrf.mxu1  ;;  %vm1767_vm2 = vcmp.gt.f32.partialorder %v1715_v59, 0.0  ;;  %v1799_v11 = vmul.f32 0.01, %v1715_v59  ;;  %v1717_v21 = vadd.f32 %v1716_v24, %v1604_v23  ;;  %v1608_v44 = vadd.f32 %v1607_v3, %v3249_v58 }
 0x1ba   : > { %v1609_v28 = vpop.f32.mrf.mxu0  ;;  %v1910_v1 = vadd.f32 %v1872_v46, %v1871_v9  ;;  %v1830_v31 = vsel %vm1766_vm1, %v1713_v0, %v1798_v49  ;;  %v1873_v34 = vmul.f32 %v3307_v12, %v1829_v54  ;;  %v1404_v0 = vadd.f32 %v3280_v38, %v3278_v37  ;;  %v3564_v46 = vld [vmem:[#allocation14_spill] sm:$0xff] }
 0x1bb   : > { %v1722_v47 = vpop.f32.mrf.mxu1  ;;  %vm1768_vm3 = vcmp.gt.f32.partialorder %v1717_v21, 0.0  ;;  %v1800_v56 = vmul.f32 0.01, %v1717_v21  ;;  %v1721_v50 = vadd.f32 %v1720_v63, %v1608_v44  ;;  %v1610_v4 = vadd.f32 %v1609_v28, %v1497_v15  ;;  %v3563_v63 = vld [vmem:[#allocation13_spill] sm:$0xff] }
 0x1bc   : > { %1911 = vadd.xlane.f32.xlu1 %v1910_v1  ;;  %v1611_v7 = vpop.f32.mrf.mxu0  ;;  %v1874_v58 = vmul.f32 %v3312_v25, %v1830_v31  ;;  %v1831_v13 = vsel %vm1767_vm2, %v1715_v59, %v1799_v11  ;;  %v1515_v49 = vadd.f32 %v3275_v36, %v1402_v10  ;;  %v1517_v54 = vadd.f32 %v3564_v46, %v1404_v0  ;;  %v3565_v11 = vld [vmem:[#allocation15_spill] sm:$0xff] }
 0x1bd   : > { %v1724_v29 = vpop.f32.mrf.mxu1  ;;  %vm1769_vm4 = vcmp.gt.f32.partialorder %v1721_v50, 0.0  ;;  %v1801_v43 = vmul.f32 0.01, %v1721_v50  ;;  %v1723_v8 = vadd.f32 %v1722_v47, %v1610_v4  ;;  %v1612_v20 = vadd.f32 %v1611_v7, %v3256_v6 }
 0x1be   : > { %v1613_v2 = vpop.f32.mrf.mxu0  ;;  %v1913_v39 = vadd.f32 %v1874_v58, %v1873_v34  ;;  %v1832_v17 = vsel %vm1768_vm3, %v1717_v21, %v1800_v56  ;;  %v1875_v14 = vmul.f32 %v3307_v12, %v1831_v13  ;;  %v1406_v21 = vadd.f32 %v3565_v11, %v3172_v45  ;;  %v3566_v56 = vld [vmem:[#allocation17_spill] sm:$0xff] }
 0x1bf   : > { %v1726_v60 = vpop.f32.mrf.mxu1  ;;  %vm1770_vm5 = vcmp.gt.f32.partialorder %v1723_v8, 0.0  ;;  %v1802_v22 = vmul.f32 0.01, %v1723_v8  ;;  %v1725_v5 = vadd.f32 %v1724_v29, %v1612_v20  ;;  %v1614_v42 = vadd.f32 %v1613_v2, %v1501_v16 }
 0x1c0   : > { %1914 = vadd.xlane.f32.xlu0 %v1913_v39  ;;  %v1617_v52 = vpop.f32.mrf.mxu0  ;;  %v1876_v55 = vmul.f32 %v3312_v25, %v1832_v17  ;;  %v1833_v26 = vsel %vm1769_vm4, %v1721_v50, %v1801_v43  ;;  %v1408_v50 = vadd.f32 %v3566_v56, %v3278_v37  ;;  %v3567_v43 = vld [vmem:[#allocation16_spill] sm:$0xff]  ;;  %v3568_v17 = vld [vmem:[#allocation18_spill] sm:$0xff]  ;;  %vm2062_vm0 = vcmask 130112  }
 0x1c1   : > { %v1730_v6 = vpop.f32.mrf.mxu1  ;;  %vm1771_vm6 = vcmp.gt.f32.partialorder %v1725_v5, 0.0  ;;  %v1803_v62 = vmul.f32 0.01, %v1725_v5  ;;  %v1727_v35 = vadd.f32 %v1726_v60, %v1614_v42  ;;  %v1618_v53 = vadd.f32 %v1617_v52, %v3263_v18 }
 0x1c2   : > { %v1619_v32 = vpop.f32.mrf.mxu0  ;;  %v1916_v15 = vadd.f32 %v1876_v55, %v1875_v14  ;;  %v1834_v41 = vsel %vm1770_vm5, %v1723_v8, %v1802_v22  ;;  %v1877_v18 = vmul.f32 %v3307_v12, %v1833_v26  ;;  %v1519_v8 = vadd.f32 %v3567_v43, %v1406_v21 }
 0x1c3   : > { %v1732_v51 = vpop.f32.mrf.mxu1  ;;  %vm1772_vm7 = vcmp.gt.f32.partialorder %v1727_v35, 0.0  ;;  %v1804_v24 = vmul.f32 0.01, %v1727_v35  ;;  %v1731_v48 = vadd.f32 %v1730_v6, %v1618_v53  ;;  %v1620_v40 = vadd.f32 %v1619_v32, %v1507_v61 }
 0x1c4   : > { %1917 = vadd.xlane.f32.xlu1 %v1916_v15  ;;  %v1621_v59 = vpop.f32.mrf.mxu0  ;;  %v1878_v30 = vmul.f32 %v3312_v25, %v1834_v41  ;;  %v1835_v38 = vsel %vm1771_vm6, %v1725_v5, %v1803_v62  ;;  %v1521_v22 = vadd.f32 %v3568_v17, %v1408_v50  ;;  %vm2069_vm1 = vcmask 195712  }
 0x1c5   : > { %v1734_v23 = vpop.f32.mrf.mxu1  ;;  %vm1773_vm8 = vcmp.gt.f32.partialorder %v1731_v48, 0.0  ;;  %v1805_v33 = vmul.f32 0.01, %v1731_v48  ;;  %v1733_v3 = vadd.f32 %v1732_v51, %v1620_v40  ;;  %v1622_v9 = vadd.f32 %v1621_v59, %v3563_v63 }
 0x1c6   : > { %v1623_v36 = vpop.f32.mrf.mxu0  ;;  %v1919_v19 = vadd.f32 %v1878_v30, %v1877_v18  ;;  %v1836_v28 = vsel %vm1772_vm7, %v1727_v35, %v1804_v24  ;;  %v1879_v7 = vmul.f32 %v3307_v12, %v1835_v38  ;;  %vm2076_vm2 = vcmask 261312  }
 0x1c7   : > { %v1736_v44 = vpop.f32.mrf.mxu1  ;;  %vm1774_vm9 = vcmp.gt.f32.partialorder %v1733_v3, 0.0  ;;  %v1806_v47 = vmul.f32 0.01, %v1733_v3  ;;  %v1735_v1 = vadd.f32 %v1734_v23, %v1622_v9  ;;  %v1624_v31 = vadd.f32 %v1623_v36, %v1511_v27 }
 0x1c8   : > { %1920 = vadd.xlane.f32.xlu0 %v1919_v19  ;;  %v1627_v4 = vpop.f32.mrf.mxu0  ;;  %v1880_v29 = vmul.f32 %v3312_v25, %v1836_v28  ;;  %v1837_v45 = vsel %vm1773_vm8, %v1731_v48, %v1805_v33  ;;  %v3428_v36 = vstv %s1937_s7  ;;  %vm2083_vm3 = vcmask 326912  }
 0x1c9   : > { %v1740_v16 = vpop.f32.mrf.mxu1  ;;  %vm1775_vm10 = vcmp.gt.f32.partialorder %v1735_v1, 0.0  ;;  %v1807_v34 = vmul.f32 0.01, %v1735_v1  ;;  %v1737_v58 = vadd.f32 %v1736_v44, %v1624_v31  ;;  %v1628_v13 = vadd.f32 %v1627_v4, %v1515_v49 }
 0x1ca   : > { %v1629_v20 = vpop.f32.mrf.mxu0  ;;  %v1922_v57 = vadd.f32 %v1880_v29, %v1879_v7  ;;  %v1838_v37 = vsel %vm1774_vm9, %v1733_v3, %v1806_v47  ;;  %v1881_v10 = vmul.f32 %v3307_v12, %v1837_v45  ;;  %vm2090_vm4 = vcmask 392512  }
 0x1cb   : > { %v1742_v61 = vpop.f32.mrf.mxu1  ;;  %vm1776_vm11 = vcmp.gt.f32.partialorder %v1737_v58, 0.0  ;;  %v1808_v2 = vmul.f32 0.01, %v1737_v58  ;;  %v1741_v60 = vadd.f32 %v1740_v16, %v1628_v13  ;;  %v1630_v39 = vadd.f32 %v1629_v20, %v1517_v54 }
 0x1cc   : > { %1923 = vadd.xlane.f32.xlu1 %v1922_v57  ;;  %v1631_v5 = vpop.f32.mrf.mxu0  ;;  %v1882_v52 = vmul.f32 %v3312_v25, %v1838_v37  ;;  %v1839_v6 = vsel %vm1775_vm10, %v1735_v1, %v1807_v34  ;;  %vm2097_vm5 = vcmask 458112   ;;  %vm2104_vm6 = vcmask 523712  }
 0x1cd   : > { %v1744_v42 = vpop.f32.mrf.mxu1  ;;  %vm1777_vm12 = vcmp.gt.f32.partialorder %v1741_v60, 0.0  ;;  %v1809_v14 = vmul.f32 0.01, %v1741_v60  ;;  %v1743_v55 = vadd.f32 %v1742_v61, %v1630_v39  ;;  %v1632_v26 = vadd.f32 %v1631_v5, %v1519_v8 }
 0x1ce   : > { %v1633_v62 = vpop.f32.mrf.mxu0  ;;  %v1925_v35 = vadd.f32 %v1882_v52, %v1881_v10  ;;  %v1840_v53 = vsel %vm1776_vm11, %v1737_v58, %v1808_v2  ;;  %v1883_v15 = vmul.f32 %v3307_v12, %v1839_v6  ;;  %vm2111_vm7 = vcmask 589312  }
 0x1cf   : > { %vm1778_vm13 = vcmp.gt.f32.partialorder %v1743_v55, 0.0  ;;  %v1810_v27 = vmul.f32 0.01, %v1743_v55  ;;  %v1745_v0 = vadd.f32 %v1744_v42, %v1632_v26  ;;  %v1634_v32 = vadd.f32 %v1633_v62, %v1521_v22  ;;  %v1746_v51 = vpop.f32.mrf.mxu1 }
 0x1d0   : > { %1926 = vadd.xlane.f32.xlu0 %v1925_v35  ;;  %v1884_v41 = vmul.f32 %v3312_v25, %v1840_v53  ;;  %v1841_v24 = vsel %vm1777_vm12, %v1741_v60, %v1809_v14  ;;  %vm2118_vm8 = vcmask 654912   ;;  %vm2125_vm9 = vcmask 720512  }
 0x1d1   : > { %vm1779_vm14 = vcmp.gt.f32.partialorder %v1745_v0, 0.0  ;;  %v1811_v48 = vmul.f32 0.01, %v1745_v0  ;;  %v1747_v40 = vadd.f32 %v1746_v51, %v1634_v32  ;;  %v1842_v49 = vsel %vm1778_vm13, %v1743_v55, %v1810_v27 }
 0x1d2   : > { %v1928_v59 = vadd.f32 %v1884_v41, %v1883_v15  ;;  %v1885_v23 = vmul.f32 %v3307_v12, %v1841_v24  ;;  %v1886_v18 = vmul.f32 %v3312_v25, %v1842_v49  ;;  %vm2132_vm10 = vcmask 786112  }
 0x1d3   : > { %vm1780_vm15 = vcmp.gt.f32.partialorder %v1747_v40, 0.0  ;;  %v1812_v30 = vmul.f32 0.01, %v1747_v40  ;;  %v1843_v38 = vsel %vm1779_vm14, %v1745_v0, %v1811_v48  ;;  %vm2139_vm11 = vcmask 851712  }
 0x1d4   : > { %1929 = vadd.xlane.f32.xlu1 %v1928_v59  ;;  %v1931_v33 = vadd.f32 %v1886_v18, %v1885_v23  ;;  %v1887_v63 = vmul.f32 %v3307_v12, %v1843_v38  ;;  %vm2146_vm12 = vcmask 917312   ;;  %vm2153_vm13 = vcmask 982912  }
 0x1d5   : > { %v1844_v3 = vsel %vm1780_vm15, %v1747_v40, %v1812_v30  ;;  %vm2160_vm14 = vcmask 1048512  }
 0x1d6   : > { %1932 = vadd.xlane.f32.xlu0 %v1931_v33  ;;  %v1888_v9 = vmul.f32 %v3312_v25, %v1844_v3 }
 0x1d8   : > { %v1934_v46 = vadd.f32 %v1888_v9, %v1887_v63 }
 0x1da   : > { %1935 = vadd.xlane.f32.xlu1 %v1934_v46 }
 0x229   : > { %v1891_v54 = vpop.xlane.xlu0 %1890 }
 0x22a   : > { %v1939_v19 = vadd.f32 %v3428_v36, %v1891_v54 }
 0x22c   : > { %v1955_v31 = vsub.f32 0.0, %v1939_v19 }
 0x22d   : > { %v1894_v21 = vpop.xlane.xlu0 %1893 }
 0x22e   : > { %v1940_v1 = vadd.f32 %v3428_v36, %v1894_v21  ;;  %v1971_v7 = vmul.f32 1.442695, %v1955_v31 }
 0x230   : > { %v1956_v4 = vsub.f32 0.0, %v1940_v1  ;;  %2746 = vpow2.f32 %v1971_v7 }
 0x231   : > { %v1897_v11 = vpop.xlane.xlu1 %1896 }
 0x232   : > { %v1941_v12 = vadd.f32 %v3428_v36, %v1897_v11  ;;  %v1973_v20 = vmul.f32 1.442695, %v1956_v4 }
 0x234   : > { %v1957_v29 = vsub.f32 0.0, %v1941_v12  ;;  %2748 = vpow2.f32 %v1973_v20 }
 0x235   : > { %v1900_v44 = vpop.xlane.xlu1 %1899 }
 0x236   : > { %v1942_v25 = vadd.f32 %v3428_v36, %v1900_v44  ;;  %v1975_v37 = vmul.f32 1.442695, %v1957_v29 }
 0x238   : > { %v1958_v58 = vsub.f32 0.0, %v1942_v25  ;;  %2750 = vpow2.f32 %v1975_v37 }
 0x239   : > { %v1903_v28 = vpop.xlane.xlu0 %1902 }
 0x23a   : > { %v1943_v16 = vadd.f32 %v3428_v36, %v1903_v28  ;;  %v1977_v39 = vmul.f32 1.442695, %v1958_v58 }
 0x23c   : > { %v1959_v61 = vsub.f32 0.0, %v1943_v16  ;;  %2752 = vpow2.f32 %v1977_v39 }
 0x23d   : > { %v1906_v47 = vpop.xlane.xlu1 %1905  ;;  %v2747_v40 = vpop.eup %2746 }
 0x23e   : > { %v1944_v45 = vadd.f32 %v3428_v36, %v1906_v47  ;;  %v1979_v10 = vmul.f32 1.442695, %v1959_v61  ;;  %v2003_v38 = vadd.f32 1.0, %v2747_v40  ;;  %v3569_v61 = vlaneseq }
 0x240   : > { %v1960_v2 = vsub.f32 0.0, %v1944_v45  ;;  %2754 = vpow2.f32 %v1979_v10 }
 0x241   : > { %v1909_v56 = vpop.xlane.xlu0 %1908  ;;  %v2749_v30 = vpop.eup %2748 }
 0x242   : > { %v1945_v13 = vadd.f32 %v3428_v36, %v1909_v56  ;;  %v1981_v6 = vmul.f32 1.442695, %v1960_v2  ;;  %v2004_v11 = vadd.f32 1.0, %v2749_v30 }
 0x244   : > { %v1961_v17 = vsub.f32 0.0, %v1945_v13  ;;  %2756 = vpow2.f32 %v1981_v6 }
 0x245   : > { %v1912_v50 = vpop.xlane.xlu1 %1911  ;;  %v2751_v63 = vpop.eup %2750 }
 0x246   : > { %v1946_v8 = vadd.f32 %v3428_v36, %v1912_v50  ;;  %v1983_v55 = vmul.f32 1.442695, %v1961_v17  ;;  %v2005_v19 = vadd.f32 1.0, %v2751_v63 }
 0x248   : > { %v1962_v5 = vsub.f32 0.0, %v1946_v8  ;;  %2758 = vpow2.f32 %v1983_v55  ;;  %v3570_v55 = vld [vmem:[#allocation12_spill] sm:$0xff] }
 0x249   : > { %v1915_v34 = vpop.xlane.xlu0 %1914  ;;  %v2753_v9 = vpop.eup %2752 }
 0x24a   : > { %v1947_v57 = vadd.f32 %v3428_v36, %v1915_v34  ;;  %v1985_v35 = vmul.f32 1.442695, %v1962_v5  ;;  %v2006_v31 = vadd.f32 1.0, %v2753_v9 }
 0x24c   : > { %v1963_v52 = vsub.f32 0.0, %v1947_v57  ;;  %2760 = vpow2.f32 %v1985_v35  ;;  %v3447_v57 = vand.u32 127, %v3569_v61 }
 0x24d   : > { %v1918_v43 = vpop.xlane.xlu1 %1917  ;;  %v2755_v44 = vpop.eup %2754 }
 0x24e   : > { %v1948_v60 = vadd.f32 %v3428_v36, %v1918_v43  ;;  %v1987_v27 = vmul.f32 1.442695, %v1963_v52  ;;  %v2007_v50 = vadd.f32 1.0, %v2755_v44  ;;  %v2064_v17 = vadd.s32 4294967280, %v3447_v57 }
 0x24f   : > { %v2071_v5 = vadd.s32 4294967272, %v3447_v57  ;;  %v2078_v10 = vadd.s32 4294967264, %v3447_v57  ;;  %v2085_v52 = vadd.s32 4294967256, %v3447_v57  ;;  %v2106_v40 = vadd.s32 4294967232, %v3447_v57 }
 0x250   : > { %v1964_v14 = vsub.f32 0.0, %v1948_v60  ;;  %2762 = vpow2.f32 %v1987_v27  ;;  %v2057_v60 = vadd.s32 4294967288, %v3447_v57  ;;  %v2067_v27 = vsub.s32 %v2064_v17, %v3570_v55 }
 0x251   : > { %v1921_v22 = vpop.xlane.xlu0 %1920  ;;  %v2757_v1 = vpop.eup %2756  ;;  %v2120_v63 = vadd.s32 4294967216, %v3447_v57 }
 0x252   : > { %v1949_v42 = vadd.f32 %v3428_v36, %v1921_v22  ;;  %v1989_v0 = vmul.f32 1.442695, %v1964_v14  ;;  %v2008_v16 = vadd.f32 1.0, %v2757_v1 }
 0x254   : > { %v1965_v26 = vsub.f32 0.0, %v1949_v42  ;;  %2764 = vpow2.f32 %v1989_v0  ;;  %v2092_v0 = vadd.s32 4294967248, %v3447_v57 }
 0x255   : > { %v1924_v62 = vpop.xlane.xlu1 %1923  ;;  %v2759_v12 = vpop.eup %2758 }
 0x256   : > { %v1950_v53 = vadd.f32 %v3428_v36, %v1924_v62  ;;  %v1991_v51 = vmul.f32 1.442695, %v1965_v26  ;;  %v2009_v45 = vadd.f32 1.0, %v2759_v12  ;;  %v2055_v26 = vsub.s32 %v3447_v57, %v3570_v55 }
 0x257   : > { %v2060_v62 = vsub.s32 %v2057_v60, %v3570_v55  ;;  %v2155_v60 = vadd.s32 4294967176, %v3447_v57 }
 0x258   : > { %v1966_v32 = vsub.f32 0.0, %v1950_v53  ;;  %2766 = vpow2.f32 %v1991_v51 }
 0x259   : > { %v1927_v15 = vpop.xlane.xlu0 %1926  ;;  %v2761_v25 = vpop.eup %2760 }
 0x25a   : > { %v1993_v41 = vmul.f32 1.442695, %v1966_v32  ;;  %v1951_v24 = vadd.f32 %v3428_v36, %v1927_v15  ;;  %v2010_v58 = vadd.f32 1.0, %v2761_v25  ;;  %v2099_v32 = vadd.s32 4294967240, %v3447_v57 }
 0x25b   : > { %v2074_v15 = vsub.s32 %v2071_v5, %v3570_v55 }
 0x25c   : > { %v1967_v48 = vsub.f32 0.0, %v1951_v24  ;;  %2768 = vpow2.f32 %v1993_v41  ;;  %v2081_v24 = vsub.s32 %v2078_v10, %v3570_v55 }
 0x25d   : > { %v1930_v49 = vpop.xlane.xlu1 %1929  ;;  %v2763_v4 = vpop.eup %2762 }
 0x25e   : > { %v1995_v59 = vmul.f32 1.442695, %v1967_v48  ;;  %v1952_v23 = vadd.f32 %v3428_v36, %v1930_v49  ;;  %v2011_v13 = vadd.f32 1.0, %v2763_v4  ;;  %v2088_v48 = vsub.s32 %v2085_v52, %v3570_v55 }
 0x25f   : > { %v1933_v18 = vpop.xlane.xlu0 %1932 }
 0x260   : > { %v1968_v33 = vsub.f32 0.0, %v1952_v23  ;;  %v1953_v3 = vadd.f32 %v3428_v36, %v1933_v18  ;;  %2770 = vpow2.f32 %v1995_v59  ;;  %v2113_v23 = vadd.s32 4294967224, %v3447_v57 }
 0x261   : > { %2772 = vrcp.f32 %v2003_v38  ;;  %v2765_v29 = vpop.eup %2764 }
 0x262   : > { %v1997_v46 = vmul.f32 1.442695, %v1968_v33  ;;  %v1969_v54 = vsub.f32 0.0, %v1953_v3  ;;  %v2012_v43 = vadd.f32 1.0, %v2765_v29  ;;  %v2095_v33 = vsub.s32 %v2092_v0, %v3570_v55 }
 0x263   : > { %v1936_v21 = vpop.xlane.xlu1 %1935  ;;  %v2102_v3 = vsub.s32 %v2099_v32, %v3570_v55  ;;  %v2116_v12 = vsub.s32 %v2113_v23, %v3570_v55 }
 0x264   : > { %v1999_v28 = vmul.f32 1.442695, %v1969_v54  ;;  %v1954_v47 = vadd.f32 %v3428_v36, %v1936_v21  ;;  %2774 = vpow2.f32 %v1997_v46 }
 0x265   : > { %v2767_v34 = vpop.eup %2766 }
 0x266   : > { %2776 = vpow2.f32 %v1999_v28  ;;  %v1970_v56 = vsub.f32 0.0, %v1954_v47  ;;  %v2013_v8 = vadd.f32 1.0, %v2767_v34  ;;  %v2134_v28 = vadd.s32 4294967200, %v3447_v57 }
 0x267   : > { %2778 = vrcp.f32 %v2004_v11  ;;  %v2127_v11 = vadd.s32 4294967208, %v3447_v57 }
 0x268   : > { %2780 = vrcp.f32 %v2005_v19  ;;  %v2001_v7 = vmul.f32 1.442695, %v1970_v56  ;;  %v2109_v19 = vsub.s32 %v2106_v40, %v3570_v55  ;;  %v2141_v56 = vadd.s32 4294967192, %v3447_v57 }
 0x269   : > { %2782 = vrcp.f32 %v2006_v31  ;;  %v2769_v36 = vpop.eup %2768 }
 0x26a   : > { %2784 = vpow2.f32 %v2001_v7  ;;  %v2014_v37 = vadd.f32 1.0, %v2769_v36  ;;  %v2148_v7 = vadd.s32 4294967184, %v3447_v57 }
 0x26b   : > { %2786 = vrcp.f32 %v2007_v50 }
 0x26c   : > { %2788 = vrcp.f32 %v2008_v16  ;;  %v2123_v16 = vsub.s32 %v2120_v63, %v3570_v55 }
 0x26d   : > { %2790 = vrcp.f32 %v2009_v45  ;;  %v2771_v20 = vpop.eup %2770 }
 0x26e   : > { %2792 = vrcp.f32 %v2010_v58  ;;  %v2015_v2 = vadd.f32 1.0, %v2771_v20  ;;  %v2773_v39 = vpop.eup %2772  ;;  %v2130_v58 = vsub.s32 %v2127_v11, %v3570_v55 }
 0x26f   : > { %2794 = vrcp.f32 %v2011_v13  ;;  %v2056_v46 = vrot.slane %v2773_v39, %v2055_v26 }
 0x270   : > { %2796 = vrcp.f32 %v2012_v43 }
 0x271   : > { %2798 = vrcp.f32 %v2013_v8  ;;  %v2775_v22 = vpop.eup %2774  ;;  %v2137_v8 = vsub.s32 %v2134_v28, %v3570_v55 }
 0x272   : > { %2800 = vrcp.f32 %v2014_v37  ;;  %v2016_v6 = vadd.f32 1.0, %v2775_v22  ;;  %v2151_v22 = vsub.s32 %v2148_v7, %v3570_v55 }
 0x273   : > { %v2777_v42 = vpop.eup %2776  ;;  %2802 = vrcp.f32 %v2015_v2  ;;  %v2144_v2 = vsub.s32 %v2141_v56, %v3570_v55 }
 0x274   : > { %v2779_v14 = vpop.eup %2778  ;;  %v2017_v35 = vadd.f32 1.0, %v2777_v42  ;;  %2804 = vrcp.f32 %v2016_v6 }
 0x275   : > { %v2781_v53 = vpop.eup %2780  ;;  %v2061_v59 = vrot.slane %v2779_v14, %v2060_v62  ;;  %v2158_v62 = vsub.s32 %v2155_v60, %v3570_v55 }
 0x276   : > { %v2783_v51 = vpop.eup %2782  ;;  %2806 = vrcp.f32 %v2017_v35  ;;  %v2068_v38 = vrot.slane %v2781_v53, %v2067_v27 }
 0x277   : > { %v2785_v41 = vpop.eup %2784  ;;  %v2075_v54 = vrot.slane %v2783_v51, %v2074_v15  ;;  %v2063_v1 = vsel %vm2062_vm0, %v2061_v59, %v2056_v46 }
 0x278   : > { %v2787_v49 = vpop.eup %2786  ;;  %v2018_v18 = vadd.f32 1.0, %v2785_v41  ;;  %v2070_v50 = vsel %vm2069_vm1, %v2068_v38, %v2063_v1 }
 0x279   : > { %v2789_v30 = vpop.eup %2788  ;;  %v2082_v44 = vrot.slane %v2787_v49, %v2081_v24  ;;  %v2077_v45 = vsel %vm2076_vm2, %v2075_v54, %v2070_v50 }
 0x27a   : > { %v2791_v9 = vpop.eup %2790  ;;  %2808 = vrcp.f32 %v2018_v18  ;;  %v2089_v31 = vrot.slane %v2789_v30, %v2088_v48 }
 0x27b   : > { %v2793_v21 = vpop.eup %2792  ;;  %v2096_v4 = vrot.slane %v2791_v9, %v2095_v33  ;;  %v2084_v13 = vsel %vm2083_vm3, %v2082_v44, %v2077_v45 }
 0x27c   : > { %v2795_v47 = vpop.eup %2794  ;;  %v2103_v34 = vrot.slane %v2793_v21, %v2102_v3  ;;  %v2091_v61 = vsel %vm2090_vm4, %v2089_v31, %v2084_v13 }
 0x27d   : > { %v2797_v25 = vpop.eup %2796  ;;  %v2110_v43 = vrot.slane %v2795_v47, %v2109_v19  ;;  %v2098_v39 = vsel %vm2097_vm5, %v2096_v4, %v2091_v61 }
 0x27e   : > { %v2799_v29 = vpop.eup %2798  ;;  %v2117_v37 = vrot.slane %v2797_v25, %v2116_v12  ;;  %v2105_v42 = vsel %vm2104_vm6, %v2103_v34, %v2098_v39 }
 0x27f   : > { %v2801_v36 = vpop.eup %2800  ;;  %v2124_v17 = vrot.slane %v2799_v29, %v2123_v16  ;;  %v2112_v6 = vsel %vm2111_vm7, %v2110_v43, %v2105_v42 }
 0x280   : > { %v2803_v20 = vpop.eup %2802  ;;  %v2131_v10 = vrot.slane %v2801_v36, %v2130_v58  ;;  %v2119_v26 = vsel %vm2118_vm8, %v2117_v37, %v2112_v6 }
 0x281   : > { %v2805_v5 = vpop.eup %2804  ;;  %v2138_v14 = vrot.slane %v2803_v20, %v2137_v8  ;;  %v2126_v35 = vsel %vm2125_vm9, %v2124_v17, %v2119_v26 }
 0x282   : > { %v2145_v57 = vrot.slane %v2805_v5, %v2144_v2  ;;  %v2133_v27 = vsel %vm2132_vm10, %v2131_v10, %v2126_v35 }
 0x283   : > { %v2807_v52 = vpop.eup %2806  ;;  %v2140_v32 = vsel %vm2139_vm11, %v2138_v14, %v2133_v27 }
 0x284   : > { %v2152_v53 = vrot.slane %v2807_v52, %v2151_v22  ;;  %v2147_v51 = vsel %vm2146_vm12, %v2145_v57, %v2140_v32 }
 0x286   : > { %v2154_v41 = vsel %vm2153_vm13, %v2152_v53, %v2147_v51 }
 0x287   : > { %v2809_v0 = vpop.eup %2808 }
 0x288   : > { %v2159_v15 = vrot.slane %v2809_v0, %v2158_v62 }
 0x28a   : > { %v2161_v55 = vsel %vm2160_vm14, %v2159_v15, %v2154_v41 }
 0x28b   : > { %2163 = vst [vmem:[%s258_s17] sm:$0x1] %v2161_v55 }
 0x28c   : > { %2877 = shalt.err (!%p2874_p0)
}
 0x28d   : > { %s2878_s13 = scalar_lea.hbm %s3494_s24, 16  ;;  %s2882_s27 = scalar_lea.hbm %s3535_s5, 64 }
 0x28e   : > { %p2879_p5 = scmp.ne.s32.totalorder %s3494_s24, %s2878_s13  ;;  %p2883_p4 = scmp.lt.s32.totalorder %s3494_s24, %s3535_s5 }
 0x28f   : > { %p2884_p6 = scmp.lt.s32.totalorder %s2882_s27, %s2878_s13 }
 0x290   : > { %p2880_p9 = pnand %p2879_p5, %p3571_p10 }
 0x291   : > { %p2885_p8 = por %p2884_p6, %p2883_p4 }
 0x292   : > { %p2881_p1 = pneg %p2880_p9 }
 0x294   : > { %p2886_p3 = pnand %p2885_p8, %p2881_p1 }
 0x296   : > { %2889 = shalt.err (!%p2886_p3)
}
 0x297   : > { %2442 = dma.vmem_to_hbm [thread:$0]  (%p3571_p10), %s2178_s16, 16, %s3494_s24, %s2165_s30  }
 0x298 PF: > { %p2459_p7 = scmp.ge.s32.totalorder %s2932_s23, 2  ;;  %s2189_s7 = sand.u32 1, %s2920_s20  }
 0x299   : > { %p3572_p11 = scmp.ne.s32.totalorder %s3545_s26, 0  ;;  %s2190_s8 = scalar_lea.sflag [#allocation5], %s2189_s7 }
 0x29b   : > { %p2453_p12 = pnand %p2459_p7, %p3572_p11 }
 0x29d   : > { %p2454_p2 = pneg %p2453_p12 }
 0x29f   : > { %2915 = dma.done.wait (%p2454_p2), %s2190_s8, 16  }
 0x2a0   : > { %2917 = vsyncadd (%p2454_p2), %s2190_s8, 4294967280  ;;  %p20_p13 = scmp.ge.s32.totalorder %s3028_s6, 6   ;;  %s3573_s20 = smov %s2924_s21 }
 0x2a1   : > { %s3574_s21 = smov %s2928_s22  ;;  %s3575_s22 = smov %s3045_s14 }
 0x2a2   : > { %s3576_s23 = smov %s3028_s6  ;;  %22 = sbr.rel (!%p20_p13) target bundleno = 8 (0x8), region = 89 }
 0x2a7   :  { %2194 = vsyncpa [#allocation4], 1 }
 0x2a8   :  { %2196 = vsyncpa [#allocation4 + $0x1], 1 }
 0x2a9   :  { %2197 = vsyncpa [#allocation7], 1 }
 0x2aa   :  { %2198 = vsyncpa [#allocation5], 1 }
 0x2ab   :  { %2200 = vsyncpa [#allocation5 + $0x1], 1 }

</bundles_post_ra>
